<compile_context>
chip_gen: v7x
topology: tpu7x:2x2x1
jax: 0.10.0
libtpu: 0.0.40
codegen_flags: <defaults>
</compile_context>

<pallas_src>
import jax
import jax.numpy as jnp
from jax.experimental import pallas as pl
from jax.experimental.pallas import tpu as pltpu

EPS = 1e-5


# ----------------------------- kernel helpers -----------------------------------------


def _fill_hpad(pad_ref, act):
    """Zero only the 1-row top/bottom border and write `act` (cast once to the scratch
    dtype, bf16) into the interior rows."""
    B, Hp2, WC = pad_ref.shape
    H = Hp2 - 2
    zero_row = jnp.zeros((B, 1, WC), pad_ref.dtype)
    pad_ref[:, 0:1, :] = zero_row
    pad_ref[:, H + 1:H + 2, :] = zero_row
    pad_ref[:, 1:H + 1, :] = act.reshape(B, H, WC).astype(pad_ref.dtype)


def _band_conv(pad_ref, w_ref):
    """3x3 conv as 3 MXU dots against width-banded weights.

    pad_ref: (B, H+2, W*Ci) H-padded, lane-collapsed activations (bf16).
    w_ref:   (3, W*Ci, W*Co) banded weights (bf16); the band realizes the dw taps and the
             width-axis zero padding exactly.
    Returns (B*H, W*Co) float32.
    """
    B, Hp2, WCi = pad_ref.shape
    H = Hp2 - 2
    # Accumulator initialized by the dh=0 dot (no zeros materialization + extra add).
    acc = jnp.dot(pad_ref[:, 0:H, :].reshape(B * H, WCi), w_ref[0],
                  preferred_element_type=jnp.float32)
    for dh in (1, 2):                                       # static unroll: 3 dots total
        acc = acc + jnp.dot(pad_ref[:, dh:dh + H, :].reshape(B * H, WCi), w_ref[dh],
                            preferred_element_type=jnp.float32)
    # TODO(synk): on v6e/v7x the three dh taps could be folded into one K=3*W*Ci dot once
    # B*H is large enough for the dots to dominate; not worth the lane-concat at this size.
    return acc


def _bn_affine_lanes(t, gamma_ref, beta_ref, csel_ref, cselt_ref, n):
    """Training-mode BatchNorm affine for a lane-collapsed (rows, W*C) tensor.

    One-pass sum/sum-of-squares stacked into a single (2, W*C) @ (W*C, C) dot for the
    per-channel stats, and a single (2, C) @ (C, W*C) dot to broadcast scale/shift back
    to lane-collapsed form.  Returns (scale_lanes, shift_lanes), each (1, W*C).
    """
    stats = jnp.concatenate([jnp.sum(t, axis=0, keepdims=True),
                             jnp.sum(t * t, axis=0, keepdims=True)], axis=0)    # (2, W*C)
    stats_c = jnp.dot(stats, csel_ref[...], preferred_element_type=jnp.float32) / n  # (2, C)
    mean_c = stats_c[0:1, :]
    var_c = stats_c[1:2, :] - mean_c * mean_c               # biased variance (train mode)
    scale_c = gamma_ref[...] * jax.lax.rsqrt(var_c + EPS)
    shift_c = beta_ref[...] - mean_c * scale_c
    aff = jnp.dot(jnp.concatenate([scale_c, shift_c], axis=0), cselt_ref[...],
                  preferred_element_type=jnp.float32)       # (2, W*C)
    return aff[0:1, :], aff[1:2, :]


def _cross_gated_concat_kernel(xc_ref,                      # (B*H, W*Ct) raw concat(x, conn)
                               g1_ref, b1_ref, p1_ref,      # (1,Ct),(1,Ct) BN params; (1,W*Ct) alpha
                               g2_ref, b2_ref, p2_ref,      # (1,Co),(1,Co) BN params; (1,W*Co) alpha
                               wq_ref, ws_ref,              # banded conv weights (bf16)
                               csel1_ref, cselt1_ref,       # (W*Ct, Ct) / (Ct, W*Ct) selectors
                               csel2_ref, cselt2_ref,       # (W*Co, Co) / (Co, W*Co) selectors
                               o_ref,                       # (B*H, W*Ct) output (aliased to xc)
                               pad1_ref, pad2_ref):         # bf16 VMEM scratch: H-padded rows
    B, Hp2, WCt = pad1_ref.shape
    H = Hp2 - 2
    Ct = csel1_ref.shape[-1]
    W = WCt // Ct
    n = B * H * W                                           # elements per channel

    xc = xc_ref[...]                                        # lane-dense (last dim = W*Ct)

    # --- query_x / query_c fused: in-kernel BN batch stats + PReLU, one 3x3 conv ---------
    s1, h1 = _bn_affine_lanes(xc, g1_ref, b1_ref, csel1_ref, cselt1_ref, n)
    xn = xc * s1 + h1
    xa = jnp.where(xn >= 0, xn, p1_ref[...] * xn)
    _fill_hpad(pad1_ref, xa)
    q = _band_conv(pad1_ref, wq_ref)                        # (B*H, W*Co) == query_x + query_c

    # --- score branch: in-kernel BN over q + PReLU ----------------------------------------
    s2, h2 = _bn_affine_lanes(q, g2_ref, b2_ref, csel2_ref, cselt2_ref, n)
    qn = q * s2 + h2
    qa = jnp.where(qn >= 0, qn, p2_ref[...] * qn)

    # --- score conv + sigmoid, then gated concat: einsum('...ji,...ji->...ji') ------------
    _fill_hpad(pad2_ref, qa)
    s = _band_conv(pad2_ref, ws_ref)                        # (B*H, W*Ct)
    o_ref[...] = (xc * jax.nn.sigmoid(s)).astype(o_ref.dtype)


# ----------------------------- wrapper --------------------------------------------------


def _banded_conv_weights(w_hwio, width):
    """(3, 3, Ci, Co) HWIO 3x3 weights -> (3, width*Ci, width*Co) banded matrices.

    big[dh, wp*Ci + ci, w*Co + co] = w_hwio[dh, wp - w + 1, ci, co] for |wp - w| <= 1 and
    0 elsewhere, so `rows @ big[dh]` on lane-collapsed activation rows performs the dw taps
    and the width-axis zero padding exactly.
    """
    kh, kw, ci, co = w_hwio.shape
    shift = jnp.zeros((kw, width, width), w_hwio.dtype)
    for dw in range(kw):
        w = jnp.arange(max(0, 1 - dw), min(width, width + 1 - dw))
        shift = shift.at[dw, w, w + dw - 1].set(1.0)
    big = jnp.einsum('kwp,dkio->dpiwo', shift, w_hwio)
    return big.reshape(kh, width * ci, width * co)


@jax.jit
def cross_gated_concat(x_nchw, conn_nchw, params):
    """x: (B, Cin, H, W); connection: (B, Cc, H, W) -> (B, Cin+Cc, H, W)."""
    x = x_nchw.astype(jnp.float32)
    c = conn_nchw.astype(jnp.float32)
    B, Cin, H, W = x.shape
    Cc = c.shape[1]
    Ct = Cin + Cc
    Co = params["wx"].shape[0]
    alpha = jnp.asarray(params["alpha"], jnp.float32)

    # Per-channel BN params for the fused (x | connection) stage; stats are computed
    # in-kernel so only gamma/beta (and tiled PReLU alphas) cross the boundary.
    g1 = jnp.concatenate([params["gx"], params["gc"]]).astype(jnp.float32).reshape(1, Ct)
    b1 = jnp.concatenate([params["bx"], params["bc"]]).astype(jnp.float32).reshape(1, Ct)
    p1 = jnp.tile(jnp.concatenate([jnp.full((Cin,), alpha[0], jnp.float32),
                                   jnp.full((Cc,), alpha[1], jnp.float32)]), W).reshape(1, -1)
    g2 = params["gs"].reshape(1, Co).astype(jnp.float32)
    b2 = params["bs"].reshape(1, Co).astype(jnp.float32)
    p2 = jnp.full((1, W * Co), alpha[2], jnp.float32)

    # Channel <-> lane-collapsed selection matrices (tiny MXU dots in-kernel; avoid
    # minor-dim reshapes for the per-channel BatchNorm statistics).
    csel1 = jnp.tile(jnp.eye(Ct, dtype=jnp.float32), (W, 1))                  # (W*Ct, Ct)
    cselt1 = csel1.T                                                          # (Ct, W*Ct)
    csel2 = jnp.tile(jnp.eye(Co, dtype=jnp.float32), (W, 1))                  # (W*Co, Co)
    cselt2 = csel2.T                                                          # (Co, W*Co)

    # Fused + banded conv weights in bf16 (PyTorch OIHW -> HWIO -> banded matmul form).
    to_hwio = lambda w: jnp.transpose(w, (2, 3, 1, 0)).astype(jnp.float32)
    w1 = jnp.concatenate([to_hwio(params["wx"]), to_hwio(params["wc"])], axis=2)  # (3,3,Ct,Co)
    wq = _banded_conv_weights(w1, W).astype(jnp.bfloat16)                     # (3, W*Ct, W*Co)
    ws = _banded_conv_weights(to_hwio(params["ws"]), W).astype(jnp.bfloat16)  # (3, W*Co, W*Ct)

    # Single NCHW -> NHWC transpose of the concatenated input, lane-collapsed and with the
    # leading dims already merged to (B*H, W*Ct) so the kernel needs no load/store reshape.
    xc = jnp.transpose(jnp.concatenate([x, c], axis=1), (0, 2, 3, 1)).reshape(B * H, W * Ct)

    # Shape-derived VMEM budget (acts + bf16 padded scratch + banded weights) with headroom,
    # clamped to stay within every generation's physical VMEM.
    need = (2 * B * H * W * Ct * 4                       # xc in + aliased out (f32)
            + 2 * B * (H + 2) * W * max(Ct, Co) * 2      # bf16 H-padded scratch buffers
            + 2 * 3 * W * W * Ct * Co * 2)               # both banded bf16 weight sets
    vmem_limit = int(min(max(4 * need, 16 << 20), 64 << 20))

    vmem = pl.BlockSpec(memory_space=pltpu.MemorySpace.VMEM)
    out = pl.pallas_call(
        _cross_gated_concat_kernel,
        out_shape=jax.ShapeDtypeStruct((B * H, W * Ct), jnp.float32),
        in_specs=[vmem] * 13,
        out_specs=vmem,
        scratch_shapes=[
            pltpu.VMEM((B, H + 2, W * Ct), jnp.bfloat16),  # H-padded rows, stage-1 conv
            pltpu.VMEM((B, H + 2, W * Co), jnp.bfloat16),  # H-padded rows, score conv
        ],
        input_output_aliases={0: 0},                       # xc's last use is the gating mul
        compiler_params=pltpu.CompilerParams(vmem_limit_bytes=vmem_limit),
    )(xc, g1, b1, p1, g2, b2, p2, wq, ws, csel1, cselt1, csel2, cselt2)

    return jnp.transpose(out.reshape(B, H, W, Ct), (0, 3, 1, 2))


# ----------------------------- reference + self-check -----------------------------------


def _reference_nchw(x, c, p):
    """Pure-JAX reference matching the PyTorch forward (training-mode BN), f32/HIGHEST."""
    def bn(v, g, b):
        mu = v.mean(axis=(0, 2, 3), keepdims=True)
        var = ((v - mu) ** 2).mean(axis=(0, 2, 3), keepdims=True)
        return (v - mu) / jnp.sqrt(var + EPS) * g.reshape(1, -1, 1, 1) + b.reshape(1, -1, 1, 1)

    def prelu(v, a):
        return jnp.where(v >= 0, v, a * v)

    def conv(v, w):
        return jax.lax.conv_general_dilated(
            v, w, (1, 1), ((1, 1), (1, 1)),
            dimension_numbers=("NCHW", "OIHW", "NCHW"),
            precision=jax.lax.Precision.HIGHEST)

    a = p["alpha"]
    qx = conv(prelu(bn(x, p["gx"], p["bx"]), a[0]), p["wx"])
    qc = conv(prelu(bn(c, p["gc"], p["bc"]), a[1]), p["wc"])
    s = jax.nn.sigmoid(conv(prelu(bn(qx + qc, p["gs"], p["bs"]), a[2]), p["ws"]))
    return jnp.concatenate([x, c], axis=1) * s


if __name__ == "__main__":
    B, H, W = 2, 16, 16
    _in, conn_in, _out = 4, 4, 8          # x channels, connection channels, query channels

    key = jax.random.PRNGKey(0)
    ks = jax.random.split(key, 12)

    params = {
        # query_x: BN(_in) params + Conv(_in -> _out, 3x3) weight (OIHW)
        "gx": 1.0 + 0.1 * jax.random.normal(ks[0], (_in,), jnp.float32),
        "bx": 0.1 * jax.random.normal(ks[1], (_in,), jnp.float32),
        "wx": 0.2 * jax.random.normal(ks[2], (_out, _in, 3, 3), jnp.float32),
        # query_c: BN(conn_in) params + Conv(conn_in -> _out, 3x3) weight
        "gc": 1.0 + 0.1 * jax.random.normal(ks[3], (conn_in,), jnp.float32),
        "bc": 0.1 * jax.random.normal(ks[4], (conn_in,), jnp.float32),
        "wc": 0.2 * jax.random.normal(ks[5], (_out, conn_in, 3, 3), jnp.float32),
        # score: BN(_out) params + Conv(_out -> _in+conn_in, 3x3) weight
        "gs": 1.0 + 0.1 * jax.random.normal(ks[6], (_out,), jnp.float32),
        "bs": 0.1 * jax.random.normal(ks[7], (_out,), jnp.float32),
        "ws": 0.2 * jax.random.normal(ks[8], (_in + conn_in, _out, 3, 3), jnp.float32),
        # PReLU alphas (one shared parameter per Activation(), PyTorch init 0.25)
        "alpha": jnp.full((3,), 0.25, jnp.float32),
    }

    x = jax.random.normal(ks[9], (B, _in, H, W), jnp.float32)
    connection = jax.random.normal(ks[10], (B, conn_in, H, W), jnp.float32)

    out = cross_gated_concat(x, connection, params)
    out = jax.block_until_ready(out)

    ref = _reference_nchw(x, connection, params)
    assert out.shape == (B, _in + conn_in, H, W)
    # bf16 MXU operands (f32 accumulation) -> loosened tolerance vs the f32 reference.
    err = float(jnp.max(jnp.abs(out - ref)))
    assert jnp.allclose(out, ref, atol=3e-2, rtol=3e-2), err

    print("KERNEL_OK")
</pallas_src>

<mosaic_0001>
module attributes {stable_mosaic.version = 11 : i64} {
  func.func @_cross_gated_concat_kernel(%arg0: memref<32x128xf32, #tpu.memory_space<vmem>>, %arg1: memref<1x8xf32, #tpu.memory_space<vmem>>, %arg2: memref<1x8xf32, #tpu.memory_space<vmem>>, %arg3: memref<1x128xf32, #tpu.memory_space<vmem>>, %arg4: memref<1x8xf32, #tpu.memory_space<vmem>>, %arg5: memref<1x8xf32, #tpu.memory_space<vmem>>, %arg6: memref<1x128xf32, #tpu.memory_space<vmem>>, %arg7: memref<3x128x128xbf16, #tpu.memory_space<vmem>>, %arg8: memref<3x128x128xbf16, #tpu.memory_space<vmem>>, %arg9: memref<128x8xf32, #tpu.memory_space<vmem>>, %arg10: memref<8x128xf32, #tpu.memory_space<vmem>>, %arg11: memref<128x8xf32, #tpu.memory_space<vmem>>, %arg12: memref<8x128xf32, #tpu.memory_space<vmem>>, %arg13: memref<32x128xf32, #tpu.memory_space<vmem>>, %arg14: memref<2x18x128xbf16, #tpu.memory_space<vmem>>, %arg15: memref<2x18x128xbf16, #tpu.memory_space<vmem>>) attributes {dimension_semantics = [], scalar_prefetch = 0 : i64, scratch_operands = 2 : i64, tpu.core_type = #tpu.core_type<tc>} {
    %c0 = arith.constant 0 : index
    %c0_0 = arith.constant 0 : index
    %0 = vector.load %arg0[%c0, %c0_0] : memref<32x128xf32, #tpu.memory_space<vmem>>, vector<32x128xf32>
    %cst = arith.constant dense<0.000000e+00> : vector<128xf32>
    %1 = vector.multi_reduction <add>, %0, %cst [0] : vector<32x128xf32> to vector<128xf32>
    %2 = vector.shape_cast %1 : vector<128xf32> to vector<1x128xf32>
    %3 = arith.mulf %0, %0 : vector<32x128xf32>
    %cst_1 = arith.constant dense<0.000000e+00> : vector<128xf32>
    %4 = vector.multi_reduction <add>, %3, %cst_1 [0] : vector<32x128xf32> to vector<128xf32>
    %5 = vector.shape_cast %4 : vector<128xf32> to vector<1x128xf32>
    %6 = tpu.concatenate %2, %5 in 0 : vector<1x128xf32>, vector<1x128xf32> -> vector<2x128xf32>
    %c0_2 = arith.constant 0 : index
    %c0_3 = arith.constant 0 : index
    %7 = vector.load %arg9[%c0_2, %c0_3] : memref<128x8xf32, #tpu.memory_space<vmem>>, vector<128x8xf32>
    %cst_4 = arith.constant dense<0.000000e+00> : vector<2x8xf32>
    %8 = tpu.matmul %6, %7, %cst_4 {dimension_numbers = #tpu.dot_dimension_numbers<[1], [0], [0], [1], [0, 0, 1, 1], [], []>} : vector<2x128xf32>, vector<128x8xf32>, vector<2x8xf32> -> vector<2x8xf32>
    %cst_5 = arith.constant 5.120000e+02 : f32
    %9 = vector.broadcast %cst_5 : f32 to vector<2x8xf32>
    %10 = arith.divf %8, %9 : vector<2x8xf32>
    %11 = vector.extract_strided_slice %10 {offsets = [0, 0], sizes = [1, 8], strides = [1, 1]} : vector<2x8xf32> to vector<1x8xf32>
    %12 = vector.extract_strided_slice %10 {offsets = [1, 0], sizes = [1, 8], strides = [1, 1]} : vector<2x8xf32> to vector<1x8xf32>
    %13 = arith.mulf %11, %11 : vector<1x8xf32>
    %14 = arith.subf %12, %13 : vector<1x8xf32>
    %c0_6 = arith.constant 0 : index
    %c0_7 = arith.constant 0 : index
    %15 = vector.load %arg1[%c0_6, %c0_7] : memref<1x8xf32, #tpu.memory_space<vmem>>, vector<1x8xf32>
    %cst_8 = arith.constant 9.99999974E-6 : f32
    %16 = vector.broadcast %cst_8 : f32 to vector<1x8xf32>
    %17 = arith.addf %14, %16 : vector<1x8xf32>
    %18 = math.rsqrt %17 : vector<1x8xf32>
    %19 = arith.mulf %15, %18 : vector<1x8xf32>
    %c0_9 = arith.constant 0 : index
    %c0_10 = arith.constant 0 : index
    %20 = vector.load %arg2[%c0_9, %c0_10] : memref<1x8xf32, #tpu.memory_space<vmem>>, vector<1x8xf32>
    %21 = arith.mulf %11, %19 : vector<1x8xf32>
    %22 = arith.subf %20, %21 : vector<1x8xf32>
    %23 = tpu.concatenate %19, %22 in 0 : vector<1x8xf32>, vector<1x8xf32> -> vector<2x8xf32>
    %c0_11 = arith.constant 0 : index
    %c0_12 = arith.constant 0 : index
    %24 = vector.load %arg10[%c0_11, %c0_12] : memref<8x128xf32, #tpu.memory_space<vmem>>, vector<8x128xf32>
    %cst_13 = arith.constant dense<0.000000e+00> : vector<2x128xf32>
    %25 = tpu.matmul %23, %24, %cst_13 {dimension_numbers = #tpu.dot_dimension_numbers<[1], [0], [0], [1], [0, 0, 1, 1], [], []>} : vector<2x8xf32>, vector<8x128xf32>, vector<2x128xf32> -> vector<2x128xf32>
    %26 = vector.extract_strided_slice %25 {offsets = [0, 0], sizes = [1, 128], strides = [1, 1]} : vector<2x128xf32> to vector<1x128xf32>
    %27 = vector.extract_strided_slice %25 {offsets = [1, 0], sizes = [1, 128], strides = [1, 1]} : vector<2x128xf32> to vector<1x128xf32>
    %28 = vector.broadcast %26 : vector<1x128xf32> to vector<32x128xf32>
    %29 = arith.mulf %0, %28 : vector<32x128xf32>
    %30 = vector.broadcast %27 : vector<1x128xf32> to vector<32x128xf32>
    %31 = arith.addf %29, %30 : vector<32x128xf32>
    %cst_14 = arith.constant 0.000000e+00 : f32
    %32 = vector.broadcast %cst_14 : f32 to vector<32x128xf32>
    %33 = arith.cmpf oge, %31, %32 : vector<32x128xf32>
    %c0_15 = arith.constant 0 : index
    %c0_16 = arith.constant 0 : index
    %34 = vector.load %arg3[%c0_15, %c0_16] : memref<1x128xf32, #tpu.memory_space<vmem>>, vector<1x128xf32>
    %35 = vector.broadcast %34 : vector<1x128xf32> to vector<32x128xf32>
    %36 = arith.mulf %35, %31 : vector<32x128xf32>
    %37 = arith.select %33, %31, %36 : vector<32x128xi1>, vector<32x128xf32>
    %cst_17 = arith.constant 0.000000e+00 : bf16
    %38 = vector.broadcast %cst_17 : bf16 to vector<2x1x128xbf16>
    %c0_18 = arith.constant 0 : index
    %c0_19 = arith.constant 0 : index
    %c0_20 = arith.constant 0 : index
    %39 = vector.load %arg14[%c0_18, %c0_19, %c0_20] : memref<2x18x128xbf16, #tpu.memory_space<vmem>>, vector<2x1x128xbf16>
    tpu.vector_store %arg14[%c0_18, %c0_19, %c0_20], %38 {strides = array<i32>} : memref<2x18x128xbf16, #tpu.memory_space<vmem>>, vector<2x1x128xbf16>,
    %c0_21 = arith.constant 0 : index
    %c17 = arith.constant 17 : index
    %c0_22 = arith.constant 0 : index
    %40 = vector.load %arg14[%c0_21, %c17, %c0_22] : memref<2x18x128xbf16, #tpu.memory_space<vmem>>, vector<2x1x128xbf16>
    tpu.vector_store %arg14[%c0_21, %c17, %c0_22], %38 {strides = array<i32>} : memref<2x18x128xbf16, #tpu.memory_space<vmem>>, vector<2x1x128xbf16>,
    %41 = vector.shape_cast %37 : vector<32x128xf32> to vector<2x16x128xf32>
    %42 = arith.truncf %41 : vector<2x16x128xf32> to vector<2x16x128xbf16>
    %c0_23 = arith.constant 0 : index
    %c1 = arith.constant 1 : index
    %c0_24 = arith.constant 0 : index
    %43 = vector.load %arg14[%c0_23, %c1, %c0_24] : memref<2x18x128xbf16, #tpu.memory_space<vmem>>, vector<2x16x128xbf16>
    tpu.vector_store %arg14[%c0_23, %c1, %c0_24], %42 {strides = array<i32>} : memref<2x18x128xbf16, #tpu.memory_space<vmem>>, vector<2x16x128xbf16>,
    %c0_25 = arith.constant 0 : index
    %c0_26 = arith.constant 0 : index
    %c0_27 = arith.constant 0 : index
    %44 = vector.load %arg14[%c0_25, %c0_26, %c0_27] : memref<2x18x128xbf16, #tpu.memory_space<vmem>>, vector<2x16x128xbf16>
    %45 = vector.shape_cast %44 : vector<2x16x128xbf16> to vector<32x128xbf16>
    %c0_28 = arith.constant 0 : index
    %c0_29 = arith.constant 0 : index
    %c0_30 = arith.constant 0 : index
    %46 = vector.load %arg7[%c0_28, %c0_29, %c0_30] : memref<3x128x128xbf16, #tpu.memory_space<vmem>>, vector<1x128x128xbf16>
    %47 = vector.shape_cast %46 : vector<1x128x128xbf16> to vector<128x128xbf16>
    %cst_31 = arith.constant dense<0.000000e+00> : vector<32x128xf32>
    %48 = tpu.matmul %45, %47, %cst_31 {dimension_numbers = #tpu.dot_dimension_numbers<[1], [0], [0], [1], [0, 0, 1, 1], [], []>} : vector<32x128xbf16>, vector<128x128xbf16>, vector<32x128xf32> -> vector<32x128xf32>
    %c0_32 = arith.constant 0 : index
    %c1_33 = arith.constant 1 : index
    %c0_34 = arith.constant 0 : index
    %49 = vector.load %arg14[%c0_32, %c1_33, %c0_34] : memref<2x18x128xbf16, #tpu.memory_space<vmem>>, vector<2x16x128xbf16>
    %50 = vector.shape_cast %49 : vector<2x16x128xbf16> to vector<32x128xbf16>
    %c1_35 = arith.constant 1 : index
    %c0_36 = arith.constant 0 : index
    %c0_37 = arith.constant 0 : index
    %51 = vector.load %arg7[%c1_35, %c0_36, %c0_37] : memref<3x128x128xbf16, #tpu.memory_space<vmem>>, vector<1x128x128xbf16>
    %52 = vector.shape_cast %51 : vector<1x128x128xbf16> to vector<128x128xbf16>
    %cst_38 = arith.constant dense<0.000000e+00> : vector<32x128xf32>
    %53 = tpu.matmul %50, %52, %cst_38 {dimension_numbers = #tpu.dot_dimension_numbers<[1], [0], [0], [1], [0, 0, 1, 1], [], []>} : vector<32x128xbf16>, vector<128x128xbf16>, vector<32x128xf32> -> vector<32x128xf32>
    %54 = arith.addf %48, %53 : vector<32x128xf32>
    %c0_39 = arith.constant 0 : index
    %c2 = arith.constant 2 : index
    %c0_40 = arith.constant 0 : index
    %55 = vector.load %arg14[%c0_39, %c2, %c0_40] : memref<2x18x128xbf16, #tpu.memory_space<vmem>>, vector<2x16x128xbf16>
    %56 = vector.shape_cast %55 : vector<2x16x128xbf16> to vector<32x128xbf16>
    %c2_41 = arith.constant 2 : index
    %c0_42 = arith.constant 0 : index
    %c0_43 = arith.constant 0 : index
    %57 = vector.load %arg7[%c2_41, %c0_42, %c0_43] : memref<3x128x128xbf16, #tpu.memory_space<vmem>>, vector<1x128x128xbf16>
    %58 = vector.shape_cast %57 : vector<1x128x128xbf16> to vector<128x128xbf16>
    %cst_44 = arith.constant dense<0.000000e+00> : vector<32x128xf32>
    %59 = tpu.matmul %56, %58, %cst_44 {dimension_numbers = #tpu.dot_dimension_numbers<[1], [0], [0], [1], [0, 0, 1, 1], [], []>} : vector<32x128xbf16>, vector<128x128xbf16>, vector<32x128xf32> -> vector<32x128xf32>
    %60 = arith.addf %54, %59 : vector<32x128xf32>
    %cst_45 = arith.constant dense<0.000000e+00> : vector<128xf32>
    %61 = vector.multi_reduction <add>, %60, %cst_45 [0] : vector<32x128xf32> to vector<128xf32>
    %62 = vector.shape_cast %61 : vector<128xf32> to vector<1x128xf32>
    %63 = arith.mulf %60, %60 : vector<32x128xf32>
    %cst_46 = arith.constant dense<0.000000e+00> : vector<128xf32>
    %64 = vector.multi_reduction <add>, %63, %cst_46 [0] : vector<32x128xf32> to vector<128xf32>
    %65 = vector.shape_cast %64 : vector<128xf32> to vector<1x128xf32>
    %66 = tpu.concatenate %62, %65 in 0 : vector<1x128xf32>, vector<1x128xf32> -> vector<2x128xf32>
    %c0_47 = arith.constant 0 : index
    %c0_48 = arith.constant 0 : index
    %67 = vector.load %arg11[%c0_47, %c0_48] : memref<128x8xf32, #tpu.memory_space<vmem>>, vector<128x8xf32>
    %cst_49 = arith.constant dense<0.000000e+00> : vector<2x8xf32>
    %68 = tpu.matmul %66, %67, %cst_49 {dimension_numbers = #tpu.dot_dimension_numbers<[1], [0], [0], [1], [0, 0, 1, 1], [], []>} : vector<2x128xf32>, vector<128x8xf32>, vector<2x8xf32> -> vector<2x8xf32>
    %cst_50 = arith.constant 5.120000e+02 : f32
    %69 = vector.broadcast %cst_50 : f32 to vector<2x8xf32>
    %70 = arith.divf %68, %69 : vector<2x8xf32>
    %71 = vector.extract_strided_slice %70 {offsets = [0, 0], sizes = [1, 8], strides = [1, 1]} : vector<2x8xf32> to vector<1x8xf32>
    %72 = vector.extract_strided_slice %70 {offsets = [1, 0], sizes = [1, 8], strides = [1, 1]} : vector<2x8xf32> to vector<1x8xf32>
    %73 = arith.mulf %71, %71 : vector<1x8xf32>
    %74 = arith.subf %72, %73 : vector<1x8xf32>
    %c0_51 = arith.constant 0 : index
    %c0_52 = arith.constant 0 : index
    %75 = vector.load %arg4[%c0_51, %c0_52] : memref<1x8xf32, #tpu.memory_space<vmem>>, vector<1x8xf32>
    %cst_53 = arith.constant 9.99999974E-6 : f32
    %76 = vector.broadcast %cst_53 : f32 to vector<1x8xf32>
    %77 = arith.addf %74, %76 : vector<1x8xf32>
    %78 = math.rsqrt %77 : vector<1x8xf32>
    %79 = arith.mulf %75, %78 : vector<1x8xf32>
    %c0_54 = arith.constant 0 : index
    %c0_55 = arith.constant 0 : index
    %80 = vector.load %arg5[%c0_54, %c0_55] : memref<1x8xf32, #tpu.memory_space<vmem>>, vector<1x8xf32>
    %81 = arith.mulf %71, %79 : vector<1x8xf32>
    %82 = arith.subf %80, %81 : vector<1x8xf32>
    %83 = tpu.concatenate %79, %82 in 0 : vector<1x8xf32>, vector<1x8xf32> -> vector<2x8xf32>
    %c0_56 = arith.constant 0 : index
    %c0_57 = arith.constant 0 : index
    %84 = vector.load %arg12[%c0_56, %c0_57] : memref<8x128xf32, #tpu.memory_space<vmem>>, vector<8x128xf32>
    %cst_58 = arith.constant dense<0.000000e+00> : vector<2x128xf32>
    %85 = tpu.matmul %83, %84, %cst_58 {dimension_numbers = #tpu.dot_dimension_numbers<[1], [0], [0], [1], [0, 0, 1, 1], [], []>} : vector<2x8xf32>, vector<8x128xf32>, vector<2x128xf32> -> vector<2x128xf32>
    %86 = vector.extract_strided_slice %85 {offsets = [0, 0], sizes = [1, 128], strides = [1, 1]} : vector<2x128xf32> to vector<1x128xf32>
    %87 = vector.extract_strided_slice %85 {offsets = [1, 0], sizes = [1, 128], strides = [1, 1]} : vector<2x128xf32> to vector<1x128xf32>
    %88 = vector.broadcast %86 : vector<1x128xf32> to vector<32x128xf32>
    %89 = arith.mulf %60, %88 : vector<32x128xf32>
    %90 = vector.broadcast %87 : vector<1x128xf32> to vector<32x128xf32>
    %91 = arith.addf %89, %90 : vector<32x128xf32>
    %cst_59 = arith.constant 0.000000e+00 : f32
    %92 = vector.broadcast %cst_59 : f32 to vector<32x128xf32>
    %93 = arith.cmpf oge, %91, %92 : vector<32x128xf32>
    %c0_60 = arith.constant 0 : index
    %c0_61 = arith.constant 0 : index
    %94 = vector.load %arg6[%c0_60, %c0_61] : memref<1x128xf32, #tpu.memory_space<vmem>>, vector<1x128xf32>
    %95 = vector.broadcast %94 : vector<1x128xf32> to vector<32x128xf32>
    %96 = arith.mulf %95, %91 : vector<32x128xf32>
    %97 = arith.select %93, %91, %96 : vector<32x128xi1>, vector<32x128xf32>
    %cst_62 = arith.constant 0.000000e+00 : bf16
    %98 = vector.broadcast %cst_62 : bf16 to vector<2x1x128xbf16>
    %c0_63 = arith.constant 0 : index
    %c0_64 = arith.constant 0 : index
    %c0_65 = arith.constant 0 : index
    %99 = vector.load %arg15[%c0_63, %c0_64, %c0_65] : memref<2x18x128xbf16, #tpu.memory_space<vmem>>, vector<2x1x128xbf16>
    tpu.vector_store %arg15[%c0_63, %c0_64, %c0_65], %98 {strides = array<i32>} : memref<2x18x128xbf16, #tpu.memory_space<vmem>>, vector<2x1x128xbf16>,
    %c0_66 = arith.constant 0 : index
    %c17_67 = arith.constant 17 : index
    %c0_68 = arith.constant 0 : index
    %100 = vector.load %arg15[%c0_66, %c17_67, %c0_68] : memref<2x18x128xbf16, #tpu.memory_space<vmem>>, vector<2x1x128xbf16>
    tpu.vector_store %arg15[%c0_66, %c17_67, %c0_68], %98 {strides = array<i32>} : memref<2x18x128xbf16, #tpu.memory_space<vmem>>, vector<2x1x128xbf16>,
    %101 = vector.shape_cast %97 : vector<32x128xf32> to vector<2x16x128xf32>
    %102 = arith.truncf %101 : vector<2x16x128xf32> to vector<2x16x128xbf16>
    %c0_69 = arith.constant 0 : index
    %c1_70 = arith.constant 1 : index
    %c0_71 = arith.constant 0 : index
    %103 = vector.load %arg15[%c0_69, %c1_70, %c0_71] : memref<2x18x128xbf16, #tpu.memory_space<vmem>>, vector<2x16x128xbf16>
    tpu.vector_store %arg15[%c0_69, %c1_70, %c0_71], %102 {strides = array<i32>} : memref<2x18x128xbf16, #tpu.memory_space<vmem>>, vector<2x16x128xbf16>,
    %c0_72 = arith.constant 0 : index
    %c0_73 = arith.constant 0 : index
    %c0_74 = arith.constant 0 : index
    %104 = vector.load %arg15[%c0_72, %c0_73, %c0_74] : memref<2x18x128xbf16, #tpu.memory_space<vmem>>, vector<2x16x128xbf16>
    %105 = vector.shape_cast %104 : vector<2x16x128xbf16> to vector<32x128xbf16>
    %c0_75 = arith.constant 0 : index
    %c0_76 = arith.constant 0 : index
    %c0_77 = arith.constant 0 : index
    %106 = vector.load %arg8[%c0_75, %c0_76, %c0_77] : memref<3x128x128xbf16, #tpu.memory_space<vmem>>, vector<1x128x128xbf16>
    %107 = vector.shape_cast %106 : vector<1x128x128xbf16> to vector<128x128xbf16>
    %cst_78 = arith.constant dense<0.000000e+00> : vector<32x128xf32>
    %108 = tpu.matmul %105, %107, %cst_78 {dimension_numbers = #tpu.dot_dimension_numbers<[1], [0], [0], [1], [0, 0, 1, 1], [], []>} : vector<32x128xbf16>, vector<128x128xbf16>, vector<32x128xf32> -> vector<32x128xf32>
    %c0_79 = arith.constant 0 : index
    %c1_80 = arith.constant 1 : index
    %c0_81 = arith.constant 0 : index
    %109 = vector.load %arg15[%c0_79, %c1_80, %c0_81] : memref<2x18x128xbf16, #tpu.memory_space<vmem>>, vector<2x16x128xbf16>
    %110 = vector.shape_cast %109 : vector<2x16x128xbf16> to vector<32x128xbf16>
    %c1_82 = arith.constant 1 : index
    %c0_83 = arith.constant 0 : index
    %c0_84 = arith.constant 0 : index
    %111 = vector.load %arg8[%c1_82, %c0_83, %c0_84] : memref<3x128x128xbf16, #tpu.memory_space<vmem>>, vector<1x128x128xbf16>
    %112 = vector.shape_cast %111 : vector<1x128x128xbf16> to vector<128x128xbf16>
    %cst_85 = arith.constant dense<0.000000e+00> : vector<32x128xf32>
    %113 = tpu.matmul %110, %112, %cst_85 {dimension_numbers = #tpu.dot_dimension_numbers<[1], [0], [0], [1], [0, 0, 1, 1], [], []>} : vector<32x128xbf16>, vector<128x128xbf16>, vector<32x128xf32> -> vector<32x128xf32>
    %114 = arith.addf %108, %113 : vector<32x128xf32>
    %c0_86 = arith.constant 0 : index
    %c2_87 = arith.constant 2 : index
    %c0_88 = arith.constant 0 : index
    %115 = vector.load %arg15[%c0_86, %c2_87, %c0_88] : memref<2x18x128xbf16, #tpu.memory_space<vmem>>, vector<2x16x128xbf16>
    %116 = vector.shape_cast %115 : vector<2x16x128xbf16> to vector<32x128xbf16>
    %c2_89 = arith.constant 2 : index
    %c0_90 = arith.constant 0 : index
    %c0_91 = arith.constant 0 : index
    %117 = vector.load %arg8[%c2_89, %c0_90, %c0_91] : memref<3x128x128xbf16, #tpu.memory_space<vmem>>, vector<1x128x128xbf16>
    %118 = vector.shape_cast %117 : vector<1x128x128xbf16> to vector<128x128xbf16>
    %cst_92 = arith.constant dense<0.000000e+00> : vector<32x128xf32>
    %119 = tpu.matmul %116, %118, %cst_92 {dimension_numbers = #tpu.dot_dimension_numbers<[1], [0], [0], [1], [0, 0, 1, 1], [], []>} : vector<32x128xbf16>, vector<128x128xbf16>, vector<32x128xf32> -> vector<32x128xf32>
    %120 = arith.addf %114, %119 : vector<32x128xf32>
    %121 = arith.negf %120 : vector<32x128xf32>
    %122 = math.exp %121 : vector<32x128xf32>
    %cst_93 = arith.constant 1.000000e+00 : f32
    %123 = vector.broadcast %cst_93 : f32 to vector<32x128xf32>
    %124 = arith.addf %123, %122 : vector<32x128xf32>
    %125 = arith.divf %123, %124 : vector<32x128xf32>
    %126 = arith.mulf %0, %125 : vector<32x128xf32>
    %c0_94 = arith.constant 0 : index
    %c0_95 = arith.constant 0 : index
    %127 = vector.load %arg13[%c0_94, %c0_95] : memref<32x128xf32, #tpu.memory_space<vmem>>, vector<32x128xf32>
    tpu.vector_store %arg13[%c0_94, %c0_95], %126 {strides = array<i32>} : memref<32x128xf32, #tpu.memory_space<vmem>>, vector<32x128xf32>,
    return
  }
}

</mosaic_0001>

<bundles_post_ra>
// kernel: tile.18
= control target key start
LH: loop header
LB: loop body
LE: loop exit
PB: predicated region body
PF: predicated region fallthrough
CT: control target
= control target key end

     0   :  { %s28_s0 = inlined_call_operand.vmem [shape: f32[8], index: 0, kind: input, shape index: {}]   ;;  %s29_s1 = inlined_call_operand.vmem [shape: f32[16,8], index: 1, kind: output, shape index: {}]  }
   0x1   :  { %v4_v0 = vld [vmem:[%s28_s0] ss:$0 sm:$0xff] }
   0x2   :  { %5 = vst [vmem:[%s29_s1] sm:$0xff] %v4_v0  ;;  %8 = vst [vmem:[%s29_s1 + $0x8] sm:$0xff] %v4_v0 }

// kernel: tile.19
= control target key start
LH: loop header
LB: loop body
LE: loop exit
PB: predicated region body
PF: predicated region fallthrough
CT: control target
= control target key end

     0   :  { %s131_s10 = smov 120   ;;  %s132_s11 = smov 104   ;;  %vm3_vm0 = vcmask 64512   ;;  %vm9_vm1 = vcmask 1048512   ;;  %vm15_vm2 = vcmask 982912   ;;  %vm21_vm3 = vcmask 917312   ;;  %s207_s0 = inlined_call_operand.vmem [shape: f32[16,8], index: 0, kind: input, shape index: {}]   ;;  %s208_s1 = inlined_call_operand.vmem [shape: f32[1,128], index: 1, kind: output, shape index: {}]  }
   0x1   :  { %v101_v0 = vld [vmem:[%s207_s0 + $0xf] sm:$0x1]   ;;  %v103_v1 = vld [vmem:[%s207_s0 + $0xd] sm:$0x1]   ;;  %v102_v2 = vld [vmem:[%s207_s0 + $0xe] sm:$0x1]  }
   0x2   :  { %7 = vrot.lane.b32.xlu0 %v101_v0, %s131_s10  ;;  %19 = vrot.lane.b32.xlu1 %v103_v1, %s132_s11  ;;  %v104_v3 = vld [vmem:[%s207_s0 + $0xc] sm:$0x1]   ;;  %s133_s16 = smov 112   ;;  %s134_s17 = smov 96   ;;  %v105_v4 = vld [vmem:[%s207_s0 + $0xb] sm:$0x1]  }
   0x3   :  { %v106_v5 = vld [vmem:[%s207_s0 + $0xa] sm:$0x1]   ;;  %v2_v6 = vld [vmem:[%s207_s0] sm:$0x1]   ;;  %s135_s24 = smov 88   ;;  %s136_s25 = smov 80  }
   0x4   :  { %4 = vst.msk [vmem:[#allocation0] sm:$0x1] %vm3_vm0, %v2_v6   ;;  %v107_v7 = vld [vmem:[%s207_s0 + $0x9] sm:$0x1]   ;;  %v108_v8 = vld [vmem:[%s207_s0 + $0x8] sm:$0x1]  }
   0x5   :  { %s137_s30 = smov 72   ;;  %s138_s2 = smov 64   ;;  %v109_v9 = vld [vmem:[%s207_s0 + $0x7] sm:$0x1]   ;;  %v110_v10 = vld [vmem:[%s207_s0 + $0x6] sm:$0x1]  }
   0x6   :  { %13 = vrot.lane.b32.xlu0 %v102_v2, %s133_s16  ;;  %25 = vrot.lane.b32.xlu1 %v104_v3, %s134_s17  ;;  %s139_s7 = smov 56   ;;  %s140_s8 = smov 48   ;;  %v111_v11 = vld [vmem:[%s207_s0 + $0x5] sm:$0x1]   ;;  %v112_v12 = vld [vmem:[%s207_s0 + $0x4] sm:$0x1]  }
   0x7   :  { %s141_s13 = smov 40   ;;  %s142_s14 = smov 32   ;;  %v113_v13 = vld [vmem:[%s207_s0 + $0x3] sm:$0x1]   ;;  %v114_v14 = vld [vmem:[%s207_s0 + $0x2] sm:$0x1]  }
   0x8   :  { %s143_s19 = smov 24   ;;  %s144_s20 = smov 16   ;;  %v115_v15 = vld [vmem:[%s207_s0 + $0x1] sm:$0x1]   ;;  %vm27_vm4 = vcmask 851712   ;;  %vm33_vm5 = vcmask 786112  }
   0x9   :  { %s145_s0 = smov 8   ;;  %vm39_vm6 = vcmask 720512   ;;  %vm45_vm7 = vcmask 654912   ;;  %vm51_vm8 = vcmask 589312   ;;  %vm57_vm9 = vcmask 523712  }
   0xa   :  { %31 = vrot.lane.b32.xlu0 %v105_v4, %s135_s24  ;;  %37 = vrot.lane.b32.xlu1 %v106_v5, %s136_s25  ;;  %vm63_vm10 = vcmask 458112   ;;  %vm69_vm11 = vcmask 392512   ;;  %vm75_vm12 = vcmask 326912   ;;  %vm81_vm13 = vcmask 261312  }
   0xb   :  { %vm87_vm14 = vcmask 195712   ;;  %vm93_vm15 = vcmask 130112  }
   0xe   :  { %43 = vrot.lane.b32.xlu0 %v107_v7, %s137_s30  ;;  %49 = vrot.lane.b32.xlu1 %v108_v8, %s138_s2 }
  0x12   :  { %55 = vrot.lane.b32.xlu0 %v109_v9, %s139_s7  ;;  %61 = vrot.lane.b32.xlu1 %v110_v10, %s140_s8 }
  0x16   :  { %67 = vrot.lane.b32.xlu0 %v111_v11, %s141_s13  ;;  %73 = vrot.lane.b32.xlu1 %v112_v12, %s142_s14 }
  0x1a   :  { %79 = vrot.lane.b32.xlu0 %v113_v13, %s143_s19  ;;  %85 = vrot.lane.b32.xlu1 %v114_v14, %s144_s20 }
  0x1e   :  { %91 = vrot.lane.b32.xlu0 %v115_v15, %s145_s0 }
  0x74   :  { %v8_v16 = vpop.permute.xlu0 %7   ;;  %v20_v17 = vpop.permute.xlu1 %19  }
  0x75   :  { %10 = vst.msk [vmem:[#allocation0] sm:$0x1] %vm9_vm1, %v8_v16  }
  0x78   :  { %v14_v18 = vpop.permute.xlu0 %13   ;;  %v26_v19 = vpop.permute.xlu1 %25  }
  0x79   :  { %16 = vst.msk [vmem:[#allocation0] sm:$0x1] %vm15_vm2, %v14_v18  }
  0x7a   :  { %22 = vst.msk [vmem:[#allocation0] sm:$0x1] %vm21_vm3, %v20_v17  }
  0x7b   :  { %28 = vst.msk [vmem:[#allocation0] sm:$0x1] %vm27_vm4, %v26_v19  }
  0x7c   :  { %v32_v20 = vpop.permute.xlu0 %31   ;;  %v38_v21 = vpop.permute.xlu1 %37  }
  0x7d   :  { %34 = vst.msk [vmem:[#allocation0] sm:$0x1] %vm33_vm5, %v32_v20  }
  0x7e   :  { %40 = vst.msk [vmem:[#allocation0] sm:$0x1] %vm39_vm6, %v38_v21  }
  0x80   :  { %v44_v22 = vpop.permute.xlu0 %43   ;;  %v50_v23 = vpop.permute.xlu1 %49  }
  0x81   :  { %46 = vst.msk [vmem:[#allocation0] sm:$0x1] %vm45_vm7, %v44_v22  }
  0x82   :  { %52 = vst.msk [vmem:[#allocation0] sm:$0x1] %vm51_vm8, %v50_v23  }
  0x84   :  { %v56_v24 = vpop.permute.xlu0 %55   ;;  %v62_v25 = vpop.permute.xlu1 %61  }
  0x85   :  { %58 = vst.msk [vmem:[#allocation0] sm:$0x1] %vm57_vm9, %v56_v24  }
  0x86   :  { %64 = vst.msk [vmem:[#allocation0] sm:$0x1] %vm63_vm10, %v62_v25  }
  0x88   :  { %v68_v26 = vpop.permute.xlu0 %67   ;;  %v74_v27 = vpop.permute.xlu1 %73  }
  0x89   :  { %70 = vst.msk [vmem:[#allocation0] sm:$0x1] %vm69_vm11, %v68_v26  }
  0x8a   :  { %76 = vst.msk [vmem:[#allocation0] sm:$0x1] %vm75_vm12, %v74_v27  }
  0x8c   :  { %v80_v28 = vpop.permute.xlu0 %79   ;;  %v86_v29 = vpop.permute.xlu1 %85  }
  0x8d   :  { %82 = vst.msk [vmem:[#allocation0] sm:$0x1] %vm81_vm13, %v80_v28  }
  0x8e   :  { %88 = vst.msk [vmem:[#allocation0] sm:$0x1] %vm87_vm14, %v86_v29  }
  0x90   :  { %v92_v30 = vpop.permute.xlu0 %91  }
  0x91   :  { %94 = vst.msk [vmem:[#allocation0] sm:$0x1] %vm93_vm15, %v92_v30  }
  0x98   :  { %v98_v31 = vld [vmem:[#allocation0] sm:$0x1] }
  0x99   :  { %100 = vst [vmem:[%s208_s1] sm:$0x1] %v98_v31 }

// kernel: tile.24
= control target key start
LH: loop header
LB: loop body
LE: loop exit
PB: predicated region body
PF: predicated region fallthrough
CT: control target
= control target key end

     0   :  { %vm6_vm0 = vcmask 1043458   ;;  %vm10_vm1 = vcmask 1045508   ;;  %vm14_vm2 = vcmask 1047558   ;;  %s19_s6 = smov 3  ;;  %s22_s7 = smov 12  ;;  %vm16_vm3 = vcmask 64512   ;;  %s736_s0 = inlined_call_operand.vmem [shape: f32[16,8,8], index: 0, kind: input, shape index: {}]   ;;  %s737_s1 = inlined_call_operand.vmem [shape: f32[128,8], index: 1, kind: output, shape index: {}]  }
   0x1   :  { %v348_v0 = vld [vmem:[%s736_s0 + $0xf] ss:$16 sm:%s19_s6]   ;;  %s27_s12 = smov 48  ;;  %s32_s13 = smov 192  ;;  %vm38_vm4 = vcmask 1048512   ;;  %vm60_vm5 = vcmask 982912  }
   0x2   :  { %v349_v1 = vld [vmem:[%s736_s0 + $0xf] ss:$16 sm:%s22_s7]   ;;  %s63_s18 = smov 3  ;;  %s66_s21 = smov 12  ;;  %vm82_vm6 = vcmask 917312   ;;  %vm104_vm7 = vcmask 851712  }
   0x3   :  { %v25_v2 = vsel %vm6_vm0, %v349_v1, %v348_v0  ;;  %v350_v3 = vld [vmem:[%s736_s0 + $0xf] ss:$16 sm:%s27_s12]   ;;  %v356_v6 = vld [vmem:[%s736_s0 + $0xd] ss:$16 sm:%s63_s18]   ;;  %s71_s22 = smov 48  ;;  %s76_s27 = smov 192 }
   0x4   :  { %v351_v4 = vld [vmem:[%s736_s0 + $0xf] ss:$16 sm:%s32_s13]   ;;  %v30_v5 = vsel %vm10_vm1, %v350_v3, %v25_v2  ;;  %v357_v8 = vld [vmem:[%s736_s0 + $0xd] ss:$16 sm:%s66_s21]   ;;  %s423_s28 = smov 120   ;;  %s41_s2 = smov 3 }
   0x5   :  { %v35_v7 = vsel %vm14_vm2, %v351_v4, %v30_v5  ;;  %v358_v9 = vld [vmem:[%s736_s0 + $0xd] ss:$16 sm:%s71_s22]   ;;  %v69_v10 = vsel %vm6_vm0, %v357_v8, %v356_v6  ;;  %s44_s3 = smov 12  ;;  %v352_v13 = vld [vmem:[%s736_s0 + $0xe] ss:$16 sm:%s41_s2]   ;;  %s49_s8 = smov 48 }
   0x6   :  { %36 = vrot.lane.b32.xlu0 %v35_v7, %s423_s28  ;;  %v359_v11 = vld [vmem:[%s736_s0 + $0xd] ss:$16 sm:%s76_s27]   ;;  %v74_v12 = vsel %vm10_vm1, %v358_v9, %v69_v10  ;;  %s54_s9 = smov 192  ;;  %s85_s14 = smov 3  ;;  %vm126_vm8 = vcmask 786112   ;;  %vm148_vm9 = vcmask 720512  }
   0x7   :  { %v353_v14 = vld [vmem:[%s736_s0 + $0xe] ss:$16 sm:%s44_s3]   ;;  %v79_v15 = vsel %vm14_vm2, %v359_v11, %v74_v12  ;;  %s424_s15 = smov 104   ;;  %v360_v20 = vld [vmem:[%s736_s0 + $0xc] ss:$16 sm:%s85_s14]   ;;  %s88_s18 = smov 12 }
   0x8   :  { %v47_v16 = vsel %vm6_vm0, %v353_v14, %v352_v13  ;;  %v354_v17 = vld [vmem:[%s736_s0 + $0xe] ss:$16 sm:%s49_s8]   ;;  %80 = vrot.lane.b32.xlu1 %v79_v15, %s424_s15  ;;  %s93_s19 = smov 48  ;;  %s98_s24 = smov 192  ;;  %vm170_vm10 = vcmask 654912   ;;  %vm192_vm11 = vcmask 589312  }
   0x9   :  { %v355_v18 = vld [vmem:[%s736_s0 + $0xe] ss:$16 sm:%s54_s9]   ;;  %v52_v19 = vsel %vm10_vm1, %v354_v17, %v47_v16  ;;  %v361_v22 = vld [vmem:[%s736_s0 + $0xc] ss:$16 sm:%s88_s18]   ;;  %s425_s25 = smov 112   ;;  %s107_s28 = smov 3 }
   0xa   :  { %v57_v21 = vsel %vm14_vm2, %v355_v18, %v52_v19  ;;  %v362_v23 = vld [vmem:[%s736_s0 + $0xc] ss:$16 sm:%s93_s19]   ;;  %v91_v24 = vsel %vm6_vm0, %v361_v22, %v360_v20  ;;  %s110_s29 = smov 12  ;;  %v364_v27 = vld [vmem:[%s736_s0 + $0xb] ss:$16 sm:%s107_s28]   ;;  %s115_s5 = smov 48 }
   0xb   :  { %58 = vrot.lane.b32.xlu0 %v57_v21, %s425_s25  ;;  %v363_v25 = vld [vmem:[%s736_s0 + $0xc] ss:$16 sm:%s98_s24]   ;;  %v96_v26 = vsel %vm10_vm1, %v362_v23, %v91_v24  ;;  %s120_s6 = smov 192  ;;  %s129_s11 = smov 3  ;;  %vm214_vm12 = vcmask 523712   ;;  %vm236_vm13 = vcmask 458112  }
   0xc   :  { %v365_v28 = vld [vmem:[%s736_s0 + $0xb] ss:$16 sm:%s110_s29]   ;;  %v101_v29 = vsel %vm14_vm2, %v363_v25, %v96_v26  ;;  %s426_s12 = smov 96   ;;  %v368_v34 = vld [vmem:[%s736_s0 + $0xa] ss:$16 sm:%s129_s11]   ;;  %s132_s15 = smov 12 }
   0xd   :  { %v113_v30 = vsel %vm6_vm0, %v365_v28, %v364_v27  ;;  %v366_v31 = vld [vmem:[%s736_s0 + $0xb] ss:$16 sm:%s115_s5]   ;;  %102 = vrot.lane.b32.xlu1 %v101_v29, %s426_s12  ;;  %s137_s16 = smov 48  ;;  %s142_s21 = smov 192  ;;  %vm258_vm14 = vcmask 392512   ;;  %vm280_vm15 = vcmask 326912  }
   0xe   :  { %v367_v32 = vld [vmem:[%s736_s0 + $0xb] ss:$16 sm:%s120_s6]   ;;  %v118_v33 = vsel %vm10_vm1, %v366_v31, %v113_v30  ;;  %v369_v36 = vld [vmem:[%s736_s0 + $0xa] ss:$16 sm:%s132_s15]   ;;  %s427_s22 = smov 88   ;;  %s151_s25 = smov 3 }
   0xf   :  { %v123_v35 = vsel %vm14_vm2, %v367_v32, %v118_v33  ;;  %v370_v37 = vld [vmem:[%s736_s0 + $0xa] ss:$16 sm:%s137_s16]   ;;  %v135_v38 = vsel %vm6_vm0, %v369_v36, %v368_v34  ;;  %s154_s26 = smov 12  ;;  %v372_v41 = vld [vmem:[%s736_s0 + $0x9] ss:$16 sm:%s151_s25]   ;;  %s159_s2 = smov 48 }
  0x10   :  { %124 = vrot.lane.b32.xlu0 %v123_v35, %s427_s22  ;;  %v371_v39 = vld [vmem:[%s736_s0 + $0xa] ss:$16 sm:%s142_s21]   ;;  %v140_v40 = vsel %vm10_vm1, %v370_v37, %v135_v38  ;;  %s164_s3 = smov 192  ;;  %s173_s8 = smov 3 }
  0x11   :  { %v373_v42 = vld [vmem:[%s736_s0 + $0x9] ss:$16 sm:%s154_s26]   ;;  %v145_v43 = vsel %vm14_vm2, %v371_v39, %v140_v40  ;;  %s428_s9 = smov 80   ;;  %v376_v48 = vld [vmem:[%s736_s0 + $0x8] ss:$16 sm:%s173_s8]   ;;  %s176_s12 = smov 12 }
  0x12   :  { %v157_v44 = vsel %vm6_vm0, %v373_v42, %v372_v41  ;;  %v374_v45 = vld [vmem:[%s736_s0 + $0x9] ss:$16 sm:%s159_s2]   ;;  %146 = vrot.lane.b32.xlu1 %v145_v43, %s428_s9  ;;  %s181_s13 = smov 48  ;;  %s186_s18 = smov 192 }
  0x13   :  { %v375_v46 = vld [vmem:[%s736_s0 + $0x9] ss:$16 sm:%s164_s3]   ;;  %v162_v47 = vsel %vm10_vm1, %v374_v45, %v157_v44  ;;  %v377_v50 = vld [vmem:[%s736_s0 + $0x8] ss:$16 sm:%s176_s12]   ;;  %s429_s19 = smov 72   ;;  %s195_s22 = smov 3 }
  0x14   :  { %v167_v49 = vsel %vm14_vm2, %v375_v46, %v162_v47  ;;  %v378_v51 = vld [vmem:[%s736_s0 + $0x8] ss:$16 sm:%s181_s13]   ;;  %v179_v52 = vsel %vm6_vm0, %v377_v50, %v376_v48  ;;  %s198_s23 = smov 12  ;;  %v380_v55 = vld [vmem:[%s736_s0 + $0x7] ss:$16 sm:%s195_s22]   ;;  %s203_s28 = smov 48 }
  0x15   :  { %168 = vrot.lane.b32.xlu0 %v167_v49, %s429_s19  ;;  %v379_v53 = vld [vmem:[%s736_s0 + $0x8] ss:$16 sm:%s186_s18]   ;;  %v184_v54 = vsel %vm10_vm1, %v378_v51, %v179_v52  ;;  %s208_s29 = smov 192  ;;  %s217_s5 = smov 3 }
  0x16   :  { %v381_v56 = vld [vmem:[%s736_s0 + $0x7] ss:$16 sm:%s198_s23]   ;;  %v189_v57 = vsel %vm14_vm2, %v379_v53, %v184_v54  ;;  %s430_s6 = smov 64   ;;  %v384_v62 = vld [vmem:[%s736_s0 + $0x6] ss:$16 sm:%s217_s5]   ;;  %s220_s9 = smov 12 }
  0x17   :  { %v201_v58 = vsel %vm6_vm0, %v381_v56, %v380_v55  ;;  %v382_v59 = vld [vmem:[%s736_s0 + $0x7] ss:$16 sm:%s203_s28]   ;;  %190 = vrot.lane.b32.xlu1 %v189_v57, %s430_s6  ;;  %s225_s10 = smov 48  ;;  %s230_s15 = smov 192 }
  0x18   :  { %v383_v60 = vld [vmem:[%s736_s0 + $0x7] ss:$16 sm:%s208_s29]   ;;  %v206_v61 = vsel %vm10_vm1, %v382_v59, %v201_v58  ;;  %v385_v0 = vld [vmem:[%s736_s0 + $0x6] ss:$16 sm:%s220_s9]   ;;  %s431_s16 = smov 56   ;;  %s239_s19 = smov 3 }
  0x19   :  { %v211_v63 = vsel %vm14_vm2, %v383_v60, %v206_v61  ;;  %v386_v1 = vld [vmem:[%s736_s0 + $0x6] ss:$16 sm:%s225_s10]   ;;  %v223_v2 = vsel %vm6_vm0, %v385_v0, %v384_v62  ;;  %s242_s20 = smov 12  ;;  %v388_v5 = vld [vmem:[%s736_s0 + $0x5] ss:$16 sm:%s239_s19]   ;;  %s247_s25 = smov 48 }
  0x1a   :  { %212 = vrot.lane.b32.xlu0 %v211_v63, %s431_s16  ;;  %v387_v3 = vld [vmem:[%s736_s0 + $0x6] ss:$16 sm:%s230_s15]   ;;  %v228_v4 = vsel %vm10_vm1, %v386_v1, %v223_v2  ;;  %s252_s26 = smov 192  ;;  %s261_s2 = smov 3 }
  0x1b   :  { %v389_v6 = vld [vmem:[%s736_s0 + $0x5] ss:$16 sm:%s242_s20]   ;;  %v233_v7 = vsel %vm14_vm2, %v387_v3, %v228_v4  ;;  %s432_s3 = smov 48   ;;  %v392_v12 = vld [vmem:[%s736_s0 + $0x4] ss:$16 sm:%s261_s2]   ;;  %s264_s6 = smov 12 }
  0x1c   :  { %v245_v8 = vsel %vm6_vm0, %v389_v6, %v388_v5  ;;  %v390_v9 = vld [vmem:[%s736_s0 + $0x5] ss:$16 sm:%s247_s25]   ;;  %234 = vrot.lane.b32.xlu1 %v233_v7, %s432_s3  ;;  %s269_s7 = smov 48  ;;  %s274_s12 = smov 192 }
  0x1d   :  { %v391_v10 = vld [vmem:[%s736_s0 + $0x5] ss:$16 sm:%s252_s26]   ;;  %v250_v11 = vsel %vm10_vm1, %v390_v9, %v245_v8  ;;  %v393_v14 = vld [vmem:[%s736_s0 + $0x4] ss:$16 sm:%s264_s6]   ;;  %s433_s13 = smov 40   ;;  %s283_s16 = smov 3 }
  0x1e   :  { %v255_v13 = vsel %vm14_vm2, %v391_v10, %v250_v11  ;;  %v394_v15 = vld [vmem:[%s736_s0 + $0x4] ss:$16 sm:%s269_s7]   ;;  %v267_v16 = vsel %vm6_vm0, %v393_v14, %v392_v12  ;;  %s286_s17 = smov 12  ;;  %v396_v19 = vld [vmem:[%s736_s0 + $0x3] ss:$16 sm:%s283_s16]   ;;  %s291_s22 = smov 48 }
  0x1f   :  { %256 = vrot.lane.b32.xlu0 %v255_v13, %s433_s13  ;;  %v395_v17 = vld [vmem:[%s736_s0 + $0x4] ss:$16 sm:%s274_s12]   ;;  %v272_v18 = vsel %vm10_vm1, %v394_v15, %v267_v16  ;;  %s296_s23 = smov 192  ;;  %s305_s28 = smov 3 }
  0x20   :  { %v397_v20 = vld [vmem:[%s736_s0 + $0x3] ss:$16 sm:%s286_s17]   ;;  %v277_v21 = vsel %vm14_vm2, %v395_v17, %v272_v18  ;;  %s434_s29 = smov 32   ;;  %v400_v26 = vld [vmem:[%s736_s0 + $0x2] ss:$16 sm:%s305_s28]   ;;  %s308_s3 = smov 12 }
  0x21   :  { %v289_v22 = vsel %vm6_vm0, %v397_v20, %v396_v19  ;;  %v398_v23 = vld [vmem:[%s736_s0 + $0x3] ss:$16 sm:%s291_s22]   ;;  %278 = vrot.lane.b32.xlu1 %v277_v21, %s434_s29  ;;  %s313_s4 = smov 48  ;;  %s318_s9 = smov 192 }
  0x22   :  { %v399_v24 = vld [vmem:[%s736_s0 + $0x3] ss:$16 sm:%s296_s23]   ;;  %v294_v25 = vsel %vm10_vm1, %v398_v23, %v289_v22  ;;  %v401_v28 = vld [vmem:[%s736_s0 + $0x2] ss:$16 sm:%s308_s3]   ;;  %s435_s10 = smov 24   ;;  %s327_s13 = smov 3 }
  0x23   :  { %v299_v27 = vsel %vm14_vm2, %v399_v24, %v294_v25  ;;  %v402_v29 = vld [vmem:[%s736_s0 + $0x2] ss:$16 sm:%s313_s4]   ;;  %v311_v30 = vsel %vm6_vm0, %v401_v28, %v400_v26  ;;  %s330_s14 = smov 12  ;;  %v404_v33 = vld [vmem:[%s736_s0 + $0x1] ss:$16 sm:%s327_s13]   ;;  %s335_s19 = smov 48 }
  0x24   :  { %300 = vrot.lane.b32.xlu0 %v299_v27, %s435_s10  ;;  %v403_v31 = vld [vmem:[%s736_s0 + $0x2] ss:$16 sm:%s318_s9]   ;;  %v316_v32 = vsel %vm10_vm1, %v402_v29, %v311_v30  ;;  %s340_s20 = smov 192  ;;  %s2_s25 = smov 3 }
  0x25   :  { %v405_v34 = vld [vmem:[%s736_s0 + $0x1] ss:$16 sm:%s330_s14]   ;;  %v321_v35 = vsel %vm14_vm2, %v403_v31, %v316_v32  ;;  %s436_s26 = smov 16   ;;  %s4_s27 = smov 12  ;;  %v3_v40 = vld [vmem:[%s736_s0] ss:$16 sm:%s2_s25]  }
  0x26   :  { %v333_v36 = vsel %vm6_vm0, %v405_v34, %v404_v33  ;;  %v406_v37 = vld [vmem:[%s736_s0 + $0x1] ss:$16 sm:%s335_s19]   ;;  %322 = vrot.lane.b32.xlu1 %v321_v35, %s436_s26  ;;  %s8_s28 = smov 48  ;;  %s12_s2 = smov 192 }
  0x27   :  { %v407_v38 = vld [vmem:[%s736_s0 + $0x1] ss:$16 sm:%s340_s20]   ;;  %v338_v39 = vsel %vm10_vm1, %v406_v37, %v333_v36  ;;  %v5_v42 = vld [vmem:[%s736_s0] ss:$16 sm:%s4_s27]   ;;  %s437_s7 = smov 8  }
  0x28   :  { %v343_v41 = vsel %vm14_vm2, %v407_v38, %v338_v39  ;;  %v9_v43 = vld [vmem:[%s736_s0] ss:$16 sm:%s8_s28]   ;;  %v7_v44 = vsel %vm6_vm0, %v5_v42, %v3_v40  ;;  %vm302_vm0 = vcmask 261312  }
  0x29   :  { %344 = vrot.lane.b32.xlu0 %v343_v41, %s437_s7  ;;  %v13_v45 = vld [vmem:[%s736_s0] ss:$16 sm:%s12_s2]   ;;  %v11_v46 = vsel %vm10_vm1, %v9_v43, %v7_v44  ;;  %vm324_vm1 = vcmask 195712  }
  0x2a   :  { %v15_v47 = vsel %vm14_vm2, %v13_v45, %v11_v46  ;;  %vm346_vm2 = vcmask 130112  }
  0x2b   :  { %17 = vst.msk [vmem:[%s737_s1] sm:$0xff] %vm16_vm3, %v15_v47  }
  0x78   :  { %v37_v48 = vpop.permute.xlu0 %36  }
  0x79   :  { %39 = vst.msk [vmem:[%s737_s1] sm:$0xff] %vm38_vm4, %v37_v48  }
  0x7a   :  { %v81_v49 = vpop.permute.xlu1 %80  }
  0x7d   :  { %v59_v50 = vpop.permute.xlu0 %58  }
  0x7e   :  { %61 = vst.msk [vmem:[%s737_s1] sm:$0xff] %vm60_vm5, %v59_v50  }
  0x7f   :  { %83 = vst.msk [vmem:[%s737_s1] sm:$0xff] %vm82_vm6, %v81_v49   ;;  %v103_v51 = vpop.permute.xlu1 %102  }
  0x80   :  { %105 = vst.msk [vmem:[%s737_s1] sm:$0xff] %vm104_vm7, %v103_v51  }
  0x82   :  { %v125_v52 = vpop.permute.xlu0 %124  }
  0x83   :  { %127 = vst.msk [vmem:[%s737_s1] sm:$0xff] %vm126_vm8, %v125_v52  }
  0x84   :  { %v147_v53 = vpop.permute.xlu1 %146  }
  0x85   :  { %149 = vst.msk [vmem:[%s737_s1] sm:$0xff] %vm148_vm9, %v147_v53  }
  0x87   :  { %v169_v54 = vpop.permute.xlu0 %168  }
  0x88   :  { %171 = vst.msk [vmem:[%s737_s1] sm:$0xff] %vm170_vm10, %v169_v54  }
  0x89   :  { %v191_v55 = vpop.permute.xlu1 %190  }
  0x8a   :  { %193 = vst.msk [vmem:[%s737_s1] sm:$0xff] %vm192_vm11, %v191_v55  }
  0x8c   :  { %v213_v56 = vpop.permute.xlu0 %212  }
  0x8d   :  { %215 = vst.msk [vmem:[%s737_s1] sm:$0xff] %vm214_vm12, %v213_v56  }
  0x8e   :  { %v235_v57 = vpop.permute.xlu1 %234  }
  0x8f   :  { %237 = vst.msk [vmem:[%s737_s1] sm:$0xff] %vm236_vm13, %v235_v57  }
  0x91   :  { %v257_v58 = vpop.permute.xlu0 %256  }
  0x92   :  { %259 = vst.msk [vmem:[%s737_s1] sm:$0xff] %vm258_vm14, %v257_v58  }
  0x93   :  { %v279_v59 = vpop.permute.xlu1 %278  }
  0x94   :  { %281 = vst.msk [vmem:[%s737_s1] sm:$0xff] %vm280_vm15, %v279_v59  }
  0x96   :  { %v301_v60 = vpop.permute.xlu0 %300  }
  0x97   :  { %303 = vst.msk [vmem:[%s737_s1] sm:$0xff] %vm302_vm0, %v301_v60  }
  0x98   :  { %v323_v61 = vpop.permute.xlu1 %322  }
  0x99   :  { %325 = vst.msk [vmem:[%s737_s1] sm:$0xff] %vm324_vm1, %v323_v61  }
  0x9b   :  { %v345_v62 = vpop.permute.xlu0 %344  }
  0x9c   :  { %347 = vst.msk [vmem:[%s737_s1] sm:$0xff] %vm346_vm2, %v345_v62  }

// kernel: cross_gated_concat.1
= control target key start
LH: loop header
LB: loop body
LE: loop exit
PB: predicated region body
PF: predicated region fallthrough
CT: control target
= control target key end

     0   :  { %v2257_v0 = vmov 0.0|0.0   ;;  %vm2258_vm0 = vmmov 0   ;;  %v2259_v4 = vmov 0.0   ;;  %vm316_vm1 = vsmask.f32 7938  ;;  %s2899_s9 = inlined_call_operand.vmem [shape: f32[128,8], index: 9, kind: input, shape index: {}, may-alias: {9,11}]   ;;  %s2900_s0 = inlined_call_operand.vmem [shape: f32[32,128], index: 0, kind: input, shape index: {}, may-alias: {0,13}]   ;;  %s2901_s10 = inlined_call_operand.vmem [shape: f32[8,128], index: 10, kind: input, shape index: {}, may-alias: {10,12}]   ;;  %s2902_s1 = inlined_call_operand.vmem [shape: f32[1,8], index: 1, kind: input, shape index: {}]   ;;  %s2903_s2 = inlined_call_operand.vmem [shape: f32[1,8], index: 2, kind: input, shape index: {}]   ;;  %s2904_s7 = inlined_call_operand.vmem [shape: bf16[3,128,128], index: 7, kind: input, shape index: {}]   ;;  %s2905_s11 = inlined_call_operand.vmem [shape: f32[128,8], index: 11, kind: input, shape index: {}, may-alias: {9,11}]   ;;  %s2906_s3 = inlined_call_operand.vmem [shape: f32[1,128], index: 3, kind: input, shape index: {}]   ;;  %s2907_s12 = inlined_call_operand.vmem [shape: f32[8,128], index: 12, kind: input, shape index: {}, may-alias: {10,12}]   ;;  %s2908_s4 = inlined_call_operand.vmem [shape: f32[1,8], index: 4, kind: input, shape index: {}]   ;;  %s2909_s5 = inlined_call_operand.vmem [shape: f32[1,8], index: 5, kind: input, shape index: {}]   ;;  %s2910_s8 = inlined_call_operand.vmem [shape: bf16[3,128,128], index: 8, kind: input, shape index: {}]   ;;  %s2911_s6 = inlined_call_operand.vmem [shape: f32[1,128], index: 6, kind: input, shape index: {}]   ;;  %s2912_s13 = inlined_call_operand.vmem [shape: f32[32,128], index: 13, kind: output, shape index: {}, may-alias: {0,13}]  }
   0x1   :  { %2113 = vmatprep.subr.bf16.mxu1 %v2257_v0  ;;  %v73_v1 = vld [vmem:[%s2899_s9] sm:$0xff]  ;;  %v74_v2 = vld [vmem:[%s2899_s9 + $0x8] sm:$0xff]  ;;  %v75_v3 = vld [vmem:[%s2899_s9 + $0x10] sm:$0xff]  ;;  %1945 = vmatprep.mubr.msk.f32.mxu1 %vm2258_vm0, %v2259_v4  ;;  %vm71_vm2 = vcmask 1040384   ;;  %vm198_vm4 = vcmask 64512   ;;  %vm378_vm12 = vcmask 1043456  }
   0x2   :  { %v2114_v5 = vpack.c.bf16 %v74_v2, %v73_v1  ;;  %v76_v6 = vld [vmem:[%s2899_s9 + $0x18] sm:$0xff]  ;;  %2137 = vmatprep.subr.bf16.mxu0 %v2257_v0  ;;  %2045 = vmatprep.mubr.msk.f32.mxu0 %vm2258_vm0, %v2259_v4  ;;  %v77_v8 = vld [vmem:[%s2899_s9 + $0x20] sm:$0xff]  ;;  %v78_v9 = vld [vmem:[%s2899_s9 + $0x28] sm:$0xff]  ;;  %vm308_vm5 = vsmask.f32 256 }
   0x3   :  { %v2117_v7 = vpack.c.bf16 %v76_v6, %v75_v3  ;;  %v2359_v10 = vld [vmem:[%s2900_s0] sm:$0xff]  ;;  %v2364_v11 = vld [vmem:[%s2900_s0 + $0x8] sm:$0xff]  ;;  %v2369_v13 = vld [vmem:[%s2900_s0 + $0x10] sm:$0xff]  ;;  %v2120_v18 = vpack.c.bf16 %v78_v9, %v77_v8  ;;  %v2260_v8 = vmov 1966171168  }
   0x4   :  { %2115 = vmatpush3.bf16.msra.mxu1 %v2114_v5  ;;  %v318_v12 = vld [vmem:[#allocation2 + $0x8] sm:$0x1]  ;;  %v2374_v14 = vld [vmem:[%s2900_s0 + $0x18] sm:$0xff]  ;;  %v49_v15 = vadd.f32 %v2364_v11, %v2359_v10  ;;  %v58_v16 = vmul.f32 %v2359_v10, %v2359_v10  ;;  %v59_v17 = vmul.f32 %v2364_v11, %v2364_v11  ;;  %v60_v19 = vmul.f32 %v2369_v13, %v2369_v13  ;;  %vm2388_vm3 = vmand %vm71_vm2, %vm316_vm1 }
   0x5   :  { %2116 = vmatprep.subr.bf16.mxu1 %v2257_v0  ;;  %v61_v20 = vmul.f32 %v2374_v14, %v2374_v14  ;;  %v321_v22 = vld [vmem:[#allocation2 + $0x14] sm:$0x1]  ;;  %v1108_v23 = vld [vmem:[#allocation3 + $0x8] sm:$0x1]  ;;  %v80_v25 = vld [vmem:[%s2899_s9 + $0x38] sm:$0xff]  ;;  %v319_v28 = vsel %vm2388_vm3, 0, %v318_v12  ;;  %v171_v9 = vunpack.c.l.s4 %v2260_v8  ;;  %v173_v12 = vlaneseq }
   0x6   :  { %v79_v24 = vld [vmem:[%s2899_s9 + $0x30] sm:$0xff]  ;;  %v50_v26 = vadd.f32 %v49_v15, %v2369_v13  ;;  %v62_v27 = vadd.f32 %v59_v17, %v58_v16  ;;  %v322_v29 = vsel %vm2388_vm3, 0, %v321_v22  ;;  %v1111_v30 = vld [vmem:[#allocation3 + $0x14] sm:$0x1]  ;;  %320 = vst [vmem:[#allocation2 + $0x8] sm:$0x1] %v319_v28  ;;  %vm2466_vm6 = vmand %vm71_vm2, %vm308_vm5 }
   0x7   :  { %323 = vst [vmem:[#allocation2 + $0x14] sm:$0x1] %v322_v29  ;;  %v1109_v31 = vsel %vm2388_vm3, 0, %v1108_v23  ;;  %v1112_v32 = vsel %vm2388_vm3, 0, %v1111_v30  ;;  %v2123_v35 = vpack.c.bf16 %v80_v25, %v79_v24  ;;  %v81_v36 = vld [vmem:[%s2899_s9 + $0x40] sm:$0xff]  ;;  %v82_v37 = vld [vmem:[%s2899_s9 + $0x48] sm:$0xff]  ;;  %v172_v15 = vunpack.c.0.s8 %v171_v9  ;;  %vm2535_vm14 = vmand %vm378_vm12, %vm316_vm1 }
   0x8   :  { %2118 = vmatpush3.bf16.msra.mxu1 %v2117_v7  ;;  %v51_v33 = vadd.f32 %v50_v26, %v2374_v14  ;;  %v63_v34 = vadd.f32 %v62_v27, %v60_v19  ;;  %1110 = vst [vmem:[#allocation3 + $0x8] sm:$0x1] %v1109_v31  ;;  %1113 = vst [vmem:[#allocation3 + $0x14] sm:$0x1] %v1112_v32  ;;  %v2126_v42 = vpack.c.bf16 %v82_v37, %v81_v36  ;;  %v83_v43 = vld [vmem:[%s2899_s9 + $0x50] sm:$0xff]  ;;  %v84_v44 = vld [vmem:[%s2899_s9 + $0x58] sm:$0xff] }
   0x9   :  { %2119 = vmatprep.subr.bf16.mxu1 %v2257_v0  ;;  %v2129_v48 = vpack.c.bf16 %v84_v44, %v83_v43  ;;  %v85_v50 = vld [vmem:[%s2899_s9 + $0x60] sm:$0xff]  ;;  %v86_v51 = vld [vmem:[%s2899_s9 + $0x68] sm:$0xff]  ;;  %v87_v56 = vld [vmem:[%s2899_s9 + $0x70] sm:$0xff]  ;;  %v2445_v16 = vshrl.u32 %v173_v12, 7  ;;  %vm336_vm11 = vsmask.f32 4368 }
   0xa   :  { %v52_v38 = vrot.slane %v51_v33, 4  ;;  %v64_v39 = vadd.f32 %v63_v34, %v61_v20  ;;  %v2132_v53 = vpack.c.bf16 %v86_v51, %v85_v50  ;;  %v88_v57 = vld [vmem:[%s2899_s9 + $0x78] sm:$0xff]  ;;  %v197_v62 = vld [vmem:[%s2901_s10] sm:$0xff]  ;;  %v2182_v36 = vld [vmem:[%s2904_s7 + $0x48] sm:$0xff]   ;;  %vm416_vm15 = vsmask.f32 3328 }
   0xb   :  { %v2135_v58 = vpack.c.bf16 %v88_v57, %v87_v56  ;;  %v2448_v17 = vsub.s32 %v172_v15, %v2445_v16  ;;  %v166_v21 = vld [vmem:[%s2902_s1] sm:$0x1]  ;;  %v2459_v26 = vsub.s32 0, %v2445_v16  ;;  %v2183_v37 = vld [vmem:[%s2904_s7 + $0x50] sm:$0xff]   ;;  %v282_v50 = vsub.s32 1, %v2445_v16  ;;  %vm2530_vm13 = vmor %vm308_vm5, %vm336_vm11 }
   0xc   :  { %2121 = vmatpush3.bf16.msra.mxu1 %v2120_v18  ;;  %v53_v40 = vadd.f32 %v52_v38, %v51_v33  ;;  %v65_v41 = vrot.slane %v64_v39, 4  ;;  %v187_v24 = vld [vmem:[%s2903_s2] sm:$0x1]  ;;  %v313_v33 = vld [vmem:[#allocation2 + $0xc] sm:$0x1]  ;;  %v2184_v38 = vld [vmem:[%s2904_s7 + $0x58] sm:$0xff]  }
   0xd   :  { %2122 = vmatprep.subr.bf16.mxu1 %v2257_v0  ;;  %v2181_v31 = vld [vmem:[%s2904_s7 + $0x40] sm:$0xff]   ;;  %vm417_vm1 = vsmask.f32 7440  ;;  %vm704_vm3 = vcmask 1042432  }
   0xe   :  { %v54_v45 = vrot.slane %v53_v40, 2  ;;  %v66_v46 = vadd.f32 %v65_v41, %v64_v39  ;;  %v310_v32 = vld [vmem:[#allocation2] sm:$0x1]  ;;  %v2187_v41 = vld [vmem:[%s2904_s7 + $0x70] sm:$0xff]   ;;  %vm2568_vm5 = vmor %vm416_vm15, %vm417_vm1 }
   0xf   :  { %v311_v34 = vsel %vm2466_vm6, 0, %v310_v32  ;;  %v2185_v39 = vld [vmem:[%s2904_s7 + $0x60] sm:$0xff]  }
  0x10   :  { %2124 = vmatpush3.bf16.msra.mxu1 %v2123_v35  ;;  %v67_v47 = vrot.slane %v66_v46, 2  ;;  %v55_v49 = vadd.f32 %v54_v45, %v53_v40  ;;  %v314_v35 = vsel %vm2466_vm6, 0, %v313_v33  ;;  %312 = vst [vmem:[#allocation2] sm:$0x1] %v311_v34  ;;  %v2186_v40 = vld [vmem:[%s2904_s7 + $0x68] sm:$0xff]   ;;  %v2501_v43 = vld [vmem:[%s2904_s7] sm:$0xff]  }
  0x11   :  { %2125 = vmatprep.subr.bf16.mxu1 %v2257_v0  ;;  %315 = vst [vmem:[#allocation2 + $0xc] sm:$0x1] %v314_v35  ;;  %v870_v44 = vld [vmem:[%s2905_s11] sm:$0xff]  ;;  %v871_v45 = vld [vmem:[%s2905_s11 + $0x8] sm:$0xff] }
  0x12   :  { %v68_v52 = vadd.f32 %v67_v47, %v66_v46  ;;  %v56_v54 = vrot.slane %v55_v49, 1  ;;  %v872_v46 = vld [vmem:[%s2905_s11 + $0x10] sm:$0xff]  ;;  %v2138_v47 = vpack.c.bf16 %v871_v45, %v870_v44  ;;  %v384_v33 = vld [vmem:[#allocation2 + $0x8] sm:$0x1] }
  0x14   :  { %2127 = vmatpush3.bf16.msra.mxu1 %v2126_v42  ;;  %v69_v55 = vrot.slane %v68_v52, 1  ;;  %v57_v59 = vadd.f32 %v56_v54, %v55_v49  ;;  %v2188_v42 = vld [vmem:[%s2904_s7 + $0x78] sm:$0xff]   ;;  %2139 = vmatpush3.bf16.msra.mxu0 %v2138_v47 }
  0x15   :  { %2128 = vmatprep.subr.bf16.mxu1 %v2257_v0  ;;  %2140 = vmatprep.subr.bf16.mxu0 %v2257_v0 }
  0x16   :  { %v70_v60 = vadd.f32 %v69_v55, %v68_v52 }
  0x18   :  { %2130 = vmatpush3.bf16.msra.mxu1 %v2129_v48  ;;  %v72_v61 = vsel %vm71_vm2, %v57_v59, %v70_v60  ;;  %v873_v48 = vld [vmem:[%s2905_s11 + $0x18] sm:$0xff] }
  0x19   :  { %2131 = vmatprep.subr.bf16.mxu1 %v2257_v0  ;;  %v2141_v49 = vpack.c.bf16 %v873_v48, %v872_v46 }
  0x1b   :  { %2142 = vmatpush3.bf16.msra.mxu0 %v2141_v49 }
  0x1c   :  { %2133 = vmatpush3.bf16.msra.mxu1 %v2132_v53  ;;  %2143 = vmatprep.subr.bf16.mxu0 %v2257_v0 }
  0x1d   :  { %2134 = vmatprep.subr.bf16.mxu1 %v2257_v0 }
  0x20   :  { %2136 = vmatpush3.bf16.msra.mxu1 %v2135_v58 }
  0x21   :  { %1948 = vmatprep.subr.mxu1 %v2259_v4 }
  0x23   :  { %1946 = vmatmul.mubr.f32.vlgmr.msra.gmra.mrb[0].mxu1 %v72_v61 }
  0x24   :  { %1950 = vmatprep.mubr.msk.f32.mxu1 %vm2258_vm0, %v2259_v4  ;;  %1949 = vmatpush3.msra.mxu1 %v197_v62 }
  0x25   :  { %1953 = vmatprep.subr.bf16.mxu1 %v2181_v31 }
  0xf6   :  { %v155_v63 = vpop.f32.mrb[0].mxu1 }
  0xf7   :  { %v160_v1 = vmul.f32 0.001953125, %v155_v63  ;;  %v1947_v2 = vpop.f32.mrb[1].mxu1  ;;  %v1664_v63 = vld [vmem:[%s2906_s3] ss:$0 sm:$0xff] }
  0xf9   :  { %v161_v3 = vmul.f32 %v160_v1, %v160_v1 }
  0xfb   :  { %v163_v5 = vrot.slane %v161_v3, 7 }
  0xfd   :  { %v165_v6 = vsub.f32 %v160_v1, %v163_v5 }
  0xff   :  { %v167_v7 = vadd.f32 1e-05, %v165_v6 }
 0x101   :  { %2233 = vrsqrt.f32 %v167_v7 }
 0x10b   :  { %v2234_v18 = vpop.eup %2233 }
 0x10c   :  { %v176_v19 = vrot.slane %v2234_v18, %v2448_v17 }
 0x10e   :  { %v177_v20 = vcombine.high %v176_v19, %v176_v19 }
 0x110   :  { %v184_v22 = vrot.slane %v177_v20, %v2448_v17 }
 0x112   :  { %v186_v23 = vmul.f32 %v184_v22, %v166_v21 }
 0x114   :  { %v188_v25 = vmul.f32 %v186_v23, %v160_v1 }
 0x116   :  { %v189_v27 = vsub.f32 %v187_v24, %v188_v25  ;;  %v380_v25 = vld [vmem:[#allocation2] sm:$0xf] }
 0x118   :  { %v194_v28 = vrot.slane %v189_v27, %v2459_v26 }
 0x11a   :  { %v196_v29 = vsel %vm71_vm2, %v186_v23, %v194_v28 }
 0x11b   :  { %1951 = vmatmul.mubr.msk.f32.vlgmr.msra.gmra.mrb[2].mxu1 %vm198_vm4, %v196_v29 }
 0x11c   :  { %1954 = vmatpush3.bf16.msra.mxu1 %v2181_v31 }
 0x11d   :  { %1955 = vmatprep.subr.bf16.mxu1 %v2182_v36 }
 0x120   :  { %1956 = vmatpush3.bf16.msra.mxu1 %v2182_v36 }
 0x121   :  { %1957 = vmatprep.subr.bf16.mxu1 %v2183_v37 }
 0x124   :  { %1958 = vmatpush3.bf16.msra.mxu1 %v2183_v37 }
 0x125   :  { %1959 = vmatprep.subr.bf16.mxu1 %v2184_v38 }
 0x128   :  { %1960 = vmatpush3.bf16.msra.mxu1 %v2184_v38  ;;  %v387_v38 = vld [vmem:[#allocation2 + $0xc] sm:$0xf] }
 0x129   :  { %1961 = vmatprep.subr.bf16.mxu1 %v2185_v39 }
 0x12c   :  { %1962 = vmatpush3.bf16.msra.mxu1 %v2185_v39  ;;  %v391_v39 = vld [vmem:[#allocation2 + $0x14] sm:$0x1] }
 0x12d   :  { %1963 = vmatprep.subr.bf16.mxu1 %v2186_v40 }
 0x130   :  { %1964 = vmatpush3.bf16.msra.mxu1 %v2186_v40 }
 0x131   :  { %1965 = vmatprep.subr.bf16.mxu1 %v2187_v41 }
 0x134   :  { %1966 = vmatpush3.bf16.msra.mxu1 %v2187_v41 }
 0x135   :  { %1967 = vmatprep.subr.bf16.mxu1 %v2188_v42 }
 0x138   :  { %1968 = vmatpush3.bf16.msra.mxu1 %v2188_v42 }
 0x139   :  { %1973 = vmatprep.subr.bf16.mxu1 %v2501_v43 }
 0x1ee   :  { %v268_v51 = vpop.f32.mrb[2].mxu1 }
 0x1ef   :  { %v275_v52 = vrot.slane %v268_v51, %v2459_v26  ;;  %v1952_v53 = vpop.f32.mrb[3].mxu1  ;;  %v283_v54 = vrot.slane %v268_v51, %v282_v50 }
 0x1f1   :  { %v276_v55 = vmul.f32 %v275_v52, %v2359_v10  ;;  %v277_v56 = vmul.f32 %v275_v52, %v2364_v11  ;;  %v278_v57 = vmul.f32 %v275_v52, %v2369_v13  ;;  %v279_v58 = vmul.f32 %v275_v52, %v2374_v14 }
 0x1f3   :  { %v284_v59 = vadd.f32 %v283_v54, %v276_v55  ;;  %v285_v60 = vadd.f32 %v283_v54, %v277_v56  ;;  %v286_v61 = vadd.f32 %v283_v54, %v278_v57  ;;  %v287_v62 = vadd.f32 %v283_v54, %v279_v58 }
 0x1f5   :  { %vm288_vm7 = vcmp.ge.f32.partialorder %v284_v59, 0.0  ;;  %vm289_vm8 = vcmp.ge.f32.partialorder %v285_v60, 0.0  ;;  %vm290_vm9 = vcmp.ge.f32.partialorder %v286_v61, 0.0  ;;  %vm291_vm10 = vcmp.ge.f32.partialorder %v287_v62, 0.0 }
 0x1f6   :  { %v299_v1 = vmul.f32 %v1664_v63, %v284_v59  ;;  %v300_v10 = vmul.f32 %v1664_v63, %v285_v60  ;;  %v301_v2 = vmul.f32 %v1664_v63, %v286_v61  ;;  %v302_v11 = vmul.f32 %v1664_v63, %v287_v62 }
 0x1f8   :  { %v303_v3 = vsel %vm288_vm7, %v284_v59, %v299_v1  ;;  %v304_v13 = vsel %vm289_vm8, %v285_v60, %v300_v10  ;;  %v305_v5 = vsel %vm290_vm9, %v286_v61, %v301_v2  ;;  %v306_v14 = vsel %vm291_vm10, %v287_v62, %v302_v11 }
 0x1f9   :  { %v1807_v6 = vpack.c.bf16 %v303_v3, %v303_v3  ;;  %v1808_v7 = vpack.c.bf16 %v304_v13, %v304_v13  ;;  %v1809_v8 = vpack.c.bf16 %v305_v5, %v305_v5  ;;  %v1810_v9 = vpack.c.bf16 %v306_v14, %v306_v14 }
 0x1fa   :  { %vm705_vm7 = vcmask 1046532  }
 0x1fb   :  { %v339_v12 = vshrl.u32 %v1807_v6, 16  ;;  %v347_v15 = vshrl.u32 %v1808_v7, 16  ;;  %v356_v18 = vshrl.u32 %v1809_v8, 16  ;;  %v364_v19 = vshrl.u32 %v1810_v9, 16  ;;  %vm2578_vm8 = vmor %vm704_vm3, %vm705_vm7 }
 0x1fc   :  { %v342_v22 = vshll.u32 %v1807_v6, 16  ;;  %v350_v24 = vshll.u32 %v1808_v7, 16  ;;  %v359_v29 = vshll.u32 %v1809_v8, 16  ;;  %v367_v32 = vshll.u32 %v1810_v9, 16  ;;  %v2218_v9 = vld [vmem:[%s2910_s8 + $0x10] sm:$0xff]  }
 0x1fd   :  { %v341_v21 = vrot.slane %v339_v12, 7  ;;  %v349_v23 = vrot.slane %v347_v15, 7  ;;  %v358_v28 = vrot.slane %v356_v18, 7  ;;  %v366_v31 = vrot.slane %v364_v19, 7 }
 0x1ff   :  { %v344_v34 = vor.u32 %v342_v22, %v341_v21  ;;  %v345_v35 = vrot.slane %v341_v21, 4  ;;  %v352_v36 = vor.u32 %v350_v24, %v349_v23  ;;  %v354_v37 = vrot.slane %v349_v23, 4 }
 0x200   :  { %v361_v40 = vor.u32 %v359_v29, %v358_v28  ;;  %v362_v41 = vrot.slane %v358_v28, 4  ;;  %v369_v42 = vor.u32 %v367_v32, %v366_v31  ;;  %v371_v44 = vrot.slane %v366_v31, 4 }
 0x201   :  { %v353_v45 = vsel %vm2530_vm13, %v345_v35, %v352_v36  ;;  %v381_v46 = vsel %vm2535_vm14, %v344_v34, %v380_v25  ;;  %v385_v47 = vsel %vm2466_vm6, %v354_v37, %v384_v33  ;;  %v2228_v35 = vld [vmem:[%s2910_s8 + $0x98] sm:$0xff]  }
 0x202   :  { %v370_v48 = vsel %vm2530_vm13, %v362_v41, %v369_v42  ;;  %382 = vst [vmem:[#allocation2] sm:$0xf] %v381_v46  ;;  %383 = vst [vmem:[#allocation2 + $0x4] sm:$0xf] %v353_v45  ;;  %v388_v49 = vsel %vm2535_vm14, %v361_v40, %v387_v38  ;;  %v392_v51 = vsel %vm2466_vm6, %v371_v44, %v391_v39  ;;  %v2191_v46 = vld [vmem:[%s2904_s7 + $0x8] sm:$0xff]  }
 0x203   :  { %386 = vst [vmem:[#allocation2 + $0x8] sm:$0x1] %v385_v47  ;;  %389 = vst [vmem:[#allocation2 + $0xc] sm:$0xf] %v388_v49  ;;  %v2192_v49 = vld [vmem:[%s2904_s7 + $0x10] sm:$0xff]  }
 0x204   :  { %390 = vst [vmem:[#allocation2 + $0x10] sm:$0xf] %v370_v48  ;;  %393 = vst [vmem:[#allocation2 + $0x14] sm:$0x1] %v392_v51  ;;  %v2193_v51 = vld [vmem:[%s2904_s7 + $0x18] sm:$0xff]  }
 0x209   :  { %v394_v52 = vld [vmem:[#allocation2] sm:$0xf]  ;;  %v2551_v53 = vld [vmem:[#allocation2 + $0x4] sm:$0xf] }
 0x20a   :  { %v2553_v54 = vld [vmem:[#allocation2 + $0x8] sm:$0x1]  ;;  %v420_v55 = vshrl.u32 %v394_v52, 16  ;;  %v423_v56 = vshll.u32 %v394_v52, 16  ;;  %v429_v57 = vshll.u32 %v2551_v53, 16  ;;  %v433_v58 = vshrl.u32 %v2551_v53, 16 }
 0x20b   :  { %v2557_v59 = vld [vmem:[#allocation2 + $0xc] sm:$0xf]  ;;  %v439_v60 = vshll.u32 %v2553_v54, 16  ;;  %v2560_v61 = vld [vmem:[#allocation2 + $0x10] sm:$0xf]  ;;  %v1695_v48 = vcombine.low %v394_v52, %v2551_v53  ;;  %v2194_v52 = vld [vmem:[%s2904_s7 + $0x20] sm:$0xff]  }
 0x20c   :  { %v444_v62 = vshrl.u32 %v2557_v59, 16  ;;  %v422_v63 = vrot.slane %v420_v55, 4  ;;  %v425_v1 = vrot.slane %v423_v56, 5  ;;  %v431_v10 = vrot.slane %v429_v57, 5  ;;  %v415_v11 = vld [vmem:[#allocation2 + $0x14] sm:$0x1] }
 0x20d   :  { %v435_v2 = vrot.slane %v433_v58, 4  ;;  %v447_v13 = vshll.u32 %v2557_v59, 16  ;;  %v453_v5 = vshll.u32 %v2560_v61, 16  ;;  %v457_v7 = vshrl.u32 %v2560_v61, 16  ;;  %v699_v8 = vld [vmem:[#allocation2 + $0xc] sm:$0xe] }
 0x20e   :  { %v446_v3 = vrot.slane %v444_v62, 4  ;;  %v426_v14 = vor.u32 %v425_v1, %v422_v63  ;;  %v441_v12 = vrot.slane %v439_v60, 5  ;;  %v463_v23 = vshll.u32 %v415_v11, 16  ;;  %v2196_v55 = vld [vmem:[%s2904_s7 + $0x30] sm:$0xff]   ;;  %v2197_v57 = vld [vmem:[%s2904_s7 + $0x38] sm:$0xff]   ;;  %v2199_v62 = vld [vmem:[%s2904_s7 + $0x80] sm:$0xff]  }
 0x20f   :  { %v436_v6 = vor.u32 %v435_v2, %v431_v10  ;;  %v449_v15 = vrot.slane %v447_v13, 5  ;;  %v455_v18 = vrot.slane %v453_v5, 5  ;;  %v459_v22 = vrot.slane %v457_v7, 4  ;;  %v698_v58 = vld [vmem:[#allocation2] sm:$0xe]  ;;  %v2204_v13 = vld [vmem:[%s2904_s7 + $0xa8] sm:$0xff]  }
 0x210   :  { %v427_v19 = vrot.slane %v426_v14, 4  ;;  %v1706_v25 = vrot.slane %v699_v8, 9  ;;  %v716_v32 = vrot.slane %v2560_v61, 5  ;;  %v465_v37 = vrot.slane %v463_v23, 5  ;;  %v2205_v5 = vld [vmem:[%s2904_s7 + $0xb0] sm:$0xff]   ;;  %v2206_v14 = vld [vmem:[%s2904_s7 + $0xb8] sm:$0xff]  }
 0x211   :  { %v437_v21 = vrot.slane %v436_v6, 4  ;;  %v450_v24 = vor.u32 %v449_v15, %v446_v3  ;;  %v460_v31 = vor.u32 %v459_v22, %v455_v18  ;;  %v719_v39 = vrot.slane %v415_v11, 5  ;;  %v2200_v11 = vld [vmem:[%s2904_s7 + $0x88] sm:$0xff]   ;;  %v874_v6 = vld [vmem:[%s2905_s11 + $0x20] sm:$0xff]  ;;  %v877_v15 = vld [vmem:[%s2905_s11 + $0x38] sm:$0xff] }
 0x212   :  { %v432_v28 = vsel %vm2568_vm5, %v427_v19, %v431_v10  ;;  %v718_v38 = vrot.slane %v716_v32, 4  ;;  %v2588_v42 = vsel %vm2578_vm8, %v1706_v25, %v716_v32  ;;  %v709_v56 = vrot.slane %v2551_v53, 5  ;;  %v875_v7 = vld [vmem:[%s2905_s11 + $0x28] sm:$0xff]  ;;  %v878_v19 = vld [vmem:[%s2905_s11 + $0x40] sm:$0xff]  ;;  %v880_v23 = vld [vmem:[%s2905_s11 + $0x50] sm:$0xff] }
 0x213   :  { %v442_v29 = vsel %vm2568_vm5, %v437_v21, %v441_v12  ;;  %v451_v34 = vrot.slane %v450_v24, 4  ;;  %v461_v36 = vrot.slane %v460_v31, 4  ;;  %v1705_v63 = vrot.slane %v698_v58, 9  ;;  %v876_v12 = vld [vmem:[%s2905_s11 + $0x30] sm:$0xff]  ;;  %v879_v21 = vld [vmem:[%s2905_s11 + $0x48] sm:$0xff]  ;;  %v881_v24 = vld [vmem:[%s2905_s11 + $0x58] sm:$0xff] }
 0x214   :  { %v1685_v33 = vcombine.low %v432_v28, %v442_v29  ;;  %v2592_v44 = vsel %vm2578_vm8, %v718_v38, %v719_v39  ;;  %v711_v60 = vrot.slane %v709_v56, 4  ;;  %v712_v1 = vrot.slane %v2553_v54, 5  ;;  %v2201_v54 = vld [vmem:[%s2904_s7 + $0x90] sm:$0xff]   ;;  %v882_v28 = vld [vmem:[%s2905_s11 + $0x60] sm:$0xff]  ;;  %v883_v29 = vld [vmem:[%s2905_s11 + $0x68] sm:$0xff] }
 0x215   :  { %v456_v40 = vsel %vm2568_vm5, %v451_v34, %v455_v18  ;;  %v466_v41 = vsel %vm2568_vm5, %v461_v36, %v465_v37  ;;  %v1724_v47 = vcombine.low %v2588_v42, %v2592_v44  ;;  %v1696_v10 = vcombine.low %v2557_v59, %v2560_v61  ;;  %v2202_v59 = vld [vmem:[%s2904_s7 + $0x98] sm:$0xff]   ;;  %v2203_v61 = vld [vmem:[%s2904_s7 + $0xa0] sm:$0xff]   ;;  %v884_v32 = vld [vmem:[%s2905_s11 + $0x70] sm:$0xff] }
 0x216   :  { %1969 = vmatprep.mubr.bf16.mxu1 %v1685_v33  ;;  %v1686_v45 = vcombine.low %v456_v40, %v466_v41  ;;  %v713_v53 = vsel %vm2578_vm8, %v711_v60, %v712_v1  ;;  %v710_v2 = vsel %vm2578_vm8, %v1705_v63, %v709_v56  ;;  %v2144_v8 = vpack.c.bf16 %v875_v7, %v874_v6  ;;  %v885_v33 = vld [vmem:[%s2905_s11 + $0x78] sm:$0xff] }
 0x217   :  { %v1723_v3 = vcombine.low %v710_v2, %v713_v53  ;;  %v2147_v18 = vpack.c.bf16 %v877_v15, %v876_v12  ;;  %v2150_v22 = vpack.c.bf16 %v879_v21, %v878_v19  ;;  %v2153_v25 = vpack.c.bf16 %v881_v24, %v880_v23  ;;  %v993_v2 = vld [vmem:[%s2907_s12] sm:$0xff]  ;;  %v1102_v23 = vld [vmem:[#allocation3] sm:$0x1] }
 0x218   :  { %1970 = vmatmul.mubr.bf16.vlgmr.msra.gmra.mrb[4].mxu1 %v1686_v45  ;;  %2145 = vmatpush3.bf16.msra.mxu0 %v2144_v8  ;;  %v2156_v31 = vpack.c.bf16 %v883_v29, %v882_v28  ;;  %v2159_v34 = vpack.c.bf16 %v885_v33, %v884_v32  ;;  %v983_v15 = vld [vmem:[%s2909_s5] sm:$0x1]  ;;  %v1105_v24 = vld [vmem:[#allocation3 + $0xc] sm:$0x1]  ;;  %v2208_v29 = vld [vmem:[%s2910_s8 + $0x48] sm:$0xff]  }
 0x219   :  { %1974 = vmatpush3.bf16.msra.mxu1 %v2501_v43  ;;  %1989 = vmatprep.mubr.bf16.mxu1 %v1695_v48  ;;  %v2195_v43 = vld [vmem:[%s2904_s7 + $0x28] sm:$0xff]   ;;  %v2207_v28 = vld [vmem:[%s2910_s8 + $0x40] sm:$0xff]   ;;  %v2210_v32 = vld [vmem:[%s2910_s8 + $0x58] sm:$0xff]  }
 0x21a   :  { %1975 = vmatprep.subr.bf16.mxu1 %v2191_v46  ;;  %2146 = vmatprep.subr.bf16.mxu0 %v2257_v0  ;;  %v2211_v33 = vld [vmem:[%s2910_s8 + $0x60] sm:$0xff]  }
 0x21c   :  { %2148 = vmatpush3.bf16.msra.mxu0 %v2147_v18 }
 0x21d   :  { %1976 = vmatpush3.bf16.msra.mxu1 %v2191_v46  ;;  %2149 = vmatprep.subr.bf16.mxu0 %v2257_v0 }
 0x21e   :  { %1977 = vmatprep.subr.bf16.mxu1 %v2192_v49 }
 0x220   :  { %2151 = vmatpush3.bf16.msra.mxu0 %v2150_v22 }
 0x221   :  { %1978 = vmatpush3.bf16.msra.mxu1 %v2192_v49  ;;  %2152 = vmatprep.subr.bf16.mxu0 %v2257_v0 }
 0x222   :  { %1979 = vmatprep.subr.bf16.mxu1 %v2193_v51 }
 0x224   :  { %2154 = vmatpush3.bf16.msra.mxu0 %v2153_v25  ;;  %v1103_v25 = vsel %vm2466_vm6, 0, %v1102_v23 }
 0x225   :  { %1980 = vmatpush3.bf16.msra.mxu1 %v2193_v51  ;;  %2155 = vmatprep.subr.bf16.mxu0 %v2257_v0  ;;  %1104 = vst [vmem:[#allocation3] sm:$0x1] %v1103_v25 }
 0x226   :  { %1981 = vmatprep.subr.bf16.mxu1 %v2194_v52 }
 0x228   :  { %2157 = vmatpush3.bf16.msra.mxu0 %v2156_v31  ;;  %v2209_v31 = vld [vmem:[%s2910_s8 + $0x50] sm:$0xff]  }
 0x229   :  { %1982 = vmatpush3.bf16.msra.mxu1 %v2194_v52  ;;  %2158 = vmatprep.subr.bf16.mxu0 %v2257_v0 }
 0x22a   :  { %1983 = vmatprep.subr.bf16.mxu1 %v2195_v43 }
 0x22c   :  { %2160 = vmatpush3.bf16.msra.mxu0 %v2159_v34  ;;  %v2212_v34 = vld [vmem:[%s2910_s8 + $0x68] sm:$0xff]  }
 0x22d   :  { %1984 = vmatpush3.bf16.msra.mxu1 %v2195_v43  ;;  %2048 = vmatprep.subr.mxu0 %v2259_v4 }
 0x22e   :  { %1985 = vmatprep.subr.bf16.mxu1 %v2196_v55 }
 0x231   :  { %1986 = vmatpush3.bf16.msra.mxu1 %v2196_v55 }
 0x232   :  { %1987 = vmatprep.subr.bf16.mxu1 %v2197_v57 }
 0x235   :  { %1988 = vmatpush3.bf16.msra.mxu1 %v2197_v57 }
 0x236   :  { %1993 = vmatprep.subr.bf16.mxu1 %v2199_v62 }
 0x238   :  { %1990 = vmatmul.mubr.bf16.vlgmr.msra.gmra.mrb[4].mxu1 %v1696_v10 }
 0x239   :  { %1994 = vmatpush3.bf16.msra.mxu1 %v2199_v62  ;;  %2009 = vmatprep.mubr.bf16.mxu1 %v1723_v3 }
 0x23a   :  { %1995 = vmatprep.subr.bf16.mxu1 %v2200_v11 }
 0x23d   :  { %1996 = vmatpush3.bf16.msra.mxu1 %v2200_v11 }
 0x23e   :  { %1997 = vmatprep.subr.bf16.mxu1 %v2201_v54 }
 0x241   :  { %1998 = vmatpush3.bf16.msra.mxu1 %v2201_v54 }
 0x242   :  { %1999 = vmatprep.subr.bf16.mxu1 %v2202_v59 }
 0x245   :  { %2000 = vmatpush3.bf16.msra.mxu1 %v2202_v59 }
 0x246   :  { %2001 = vmatprep.subr.bf16.mxu1 %v2203_v61 }
 0x249   :  { %2002 = vmatpush3.bf16.msra.mxu1 %v2203_v61 }
 0x24a   :  { %2003 = vmatprep.subr.bf16.mxu1 %v2204_v13 }
 0x24d   :  { %2004 = vmatpush3.bf16.msra.mxu1 %v2204_v13 }
 0x24e   :  { %2005 = vmatprep.subr.bf16.mxu1 %v2205_v5 }
 0x251   :  { %2006 = vmatpush3.bf16.msra.mxu1 %v2205_v5 }
 0x252   :  { %2007 = vmatprep.subr.bf16.mxu1 %v2206_v14 }
 0x255   :  { %2008 = vmatpush3.bf16.msra.mxu1 %v2206_v14 }
 0x258   :  { %2010 = vmatmul.mubr.bf16.vlgmr.msra.gmra.mrb[4].mxu1 %v1724_v47 }
 0x32b   :  { %v2693_v36 = vpop.f32.mrb[4].mxu1 }
 0x32c   :  { %v2695_v37 = vpop.f32.mrb[5].mxu1  ;;  %v858_v42 = vmul.f32 %v2693_v36, %v2693_v36 }
 0x32d   :  { %v2697_v38 = vpop.f32.mrb[6].mxu1  ;;  %v856_v40 = vmul.f32 %v2695_v37, %v2695_v37 }
 0x32e   :  { %v2699_v39 = vpop.f32.mrb[7].mxu1  ;;  %v859_v46 = vmul.f32 %v2697_v38, %v2697_v38 }
 0x32f   :  { %v847_v41 = vadd.f32 %v2699_v39, %v2695_v37  ;;  %v857_v0 = vmul.f32 %v2699_v39, %v2699_v39 }
 0x331   :  { %v848_v44 = vadd.f32 %v2693_v36, %v847_v41  ;;  %v860_v45 = vadd.f32 %v857_v0, %v856_v40  ;;  %v2213_v40 = vld [vmem:[%s2910_s8 + $0x70] sm:$0xff]   ;;  %v2214_v41 = vld [vmem:[%s2910_s8 + $0x78] sm:$0xff]   ;;  %v2761_v0 = vld [vmem:[%s2910_s8] sm:$0xff]  }
 0x333   :  { %v849_v47 = vadd.f32 %v2697_v38, %v848_v44  ;;  %v861_v48 = vadd.f32 %v860_v45, %v858_v42 }
 0x335   :  { %v850_v49 = vrot.slane %v849_v47, 4  ;;  %v862_v51 = vadd.f32 %v861_v48, %v859_v46 }
 0x337   :  { %v851_v52 = vadd.f32 %v850_v49, %v849_v47  ;;  %v863_v43 = vrot.slane %v862_v51, 4 }
 0x339   :  { %v852_v55 = vrot.slane %v851_v52, 2  ;;  %v864_v56 = vadd.f32 %v863_v43, %v862_v51 }
 0x33b   :  { %v853_v57 = vadd.f32 %v852_v55, %v851_v52  ;;  %v865_v58 = vrot.slane %v864_v56, 2 }
 0x33d   :  { %v854_v60 = vrot.slane %v853_v57, 1  ;;  %v866_v62 = vadd.f32 %v865_v58, %v864_v56 }
 0x33f   :  { %v867_v63 = vrot.slane %v866_v62, 1  ;;  %v855_v1 = vadd.f32 %v854_v60, %v853_v57 }
 0x341   :  { %v868_v53 = vadd.f32 %v867_v63, %v866_v62 }
 0x343   :  { %v869_v10 = vsel %vm71_vm2, %v855_v1, %v868_v53 }
 0x344   :  { %2046 = vmatmul.mubr.f32.vlgmr.msra.gmra.mrb[0].mxu0 %v869_v10 }
 0x345   :  { %2050 = vmatprep.mubr.msk.f32.mxu0 %vm2258_vm0, %v2259_v4  ;;  %2049 = vmatpush3.msra.mxu0 %v993_v2  ;;  %v962_v4 = vld [vmem:[%s2908_s4] sm:$0x1] }
 0x346   :  { %2053 = vmatprep.subr.bf16.mxu0 %v2207_v28 }
 0x417   :  { %v952_v11 = vpop.f32.mrb[0].mxu0 }
 0x418   :  { %v956_v3 = vmul.f32 0.001953125, %v952_v11  ;;  %v2047_v54 = vpop.f32.mrb[1].mxu0 }
 0x41a   :  { %v957_v59 = vmul.f32 %v956_v3, %v956_v3 }
 0x41c   :  { %v959_v61 = vrot.slane %v957_v59, 7 }
 0x41e   :  { %v961_v13 = vsub.f32 %v956_v3, %v959_v61 }
 0x420   :  { %v963_v5 = vadd.f32 1e-05, %v961_v13  ;;  %v1166_v13 = vld [vmem:[#allocation3] sm:$0xf] }
 0x422   :  { %2235 = vrsqrt.f32 %v963_v5 }
 0x42c   :  { %v2236_v14 = vpop.eup %2235 }
 0x42d   :  { %v972_v6 = vrot.slane %v2236_v14, %v2448_v17 }
 0x42f   :  { %v973_v7 = vcombine.high %v972_v6, %v972_v6 }
 0x431   :  { %v980_v8 = vrot.slane %v973_v7, %v2448_v17  ;;  %v1106_v17 = vsel %vm2466_vm6, 0, %v1105_v24 }
 0x432   :  { %1107 = vst [vmem:[#allocation3 + $0xc] sm:$0x1] %v1106_v17 }
 0x433   :  { %v982_v12 = vmul.f32 %v980_v8, %v962_v4  ;;  %v1170_v4 = vld [vmem:[#allocation3 + $0x8] sm:$0x1] }
 0x435   :  { %v984_v18 = vmul.f32 %v982_v12, %v956_v3 }
 0x437   :  { %v985_v19 = vsub.f32 %v983_v15, %v984_v18 }
 0x439   :  { %v990_v21 = vrot.slane %v985_v19, %v2459_v26  ;;  %v1173_v19 = vld [vmem:[#allocation3 + $0xc] sm:$0xf] }
 0x43b   :  { %v992_v22 = vsel %vm71_vm2, %v982_v12, %v990_v21  ;;  %v1177_v21 = vld [vmem:[#allocation3 + $0x14] sm:$0x1] }
 0x43c   :  { %2051 = vmatmul.mubr.msk.f32.vlgmr.msra.gmra.mrb[2].mxu0 %vm198_vm4, %v992_v22 }
 0x43d   :  { %2054 = vmatpush3.bf16.msra.mxu0 %v2207_v28 }
 0x43e   :  { %2055 = vmatprep.subr.bf16.mxu0 %v2208_v29 }
 0x441   :  { %2056 = vmatpush3.bf16.msra.mxu0 %v2208_v29 }
 0x442   :  { %2057 = vmatprep.subr.bf16.mxu0 %v2209_v31 }
 0x445   :  { %2058 = vmatpush3.bf16.msra.mxu0 %v2209_v31 }
 0x446   :  { %2059 = vmatprep.subr.bf16.mxu0 %v2210_v32 }
 0x449   :  { %2060 = vmatpush3.bf16.msra.mxu0 %v2210_v32 }
 0x44a   :  { %2061 = vmatprep.subr.bf16.mxu0 %v2211_v33 }
 0x44d   :  { %2062 = vmatpush3.bf16.msra.mxu0 %v2211_v33 }
 0x44e   :  { %2063 = vmatprep.subr.bf16.mxu0 %v2212_v34 }
 0x451   :  { %2064 = vmatpush3.bf16.msra.mxu0 %v2212_v34 }
 0x452   :  { %2065 = vmatprep.subr.bf16.mxu0 %v2213_v40 }
 0x455   :  { %2066 = vmatpush3.bf16.msra.mxu0 %v2213_v40 }
 0x456   :  { %2067 = vmatprep.subr.bf16.mxu0 %v2214_v41 }
 0x459   :  { %2068 = vmatpush3.bf16.msra.mxu0 %v2214_v41 }
 0x45a   :  { %2073 = vmatprep.subr.bf16.mxu0 %v2761_v0 }
 0x50f   :  { %v1063_v42 = vpop.f32.mrb[2].mxu0 }
 0x510   :  { %v1070_v44 = vrot.slane %v1063_v42, %v2459_v26  ;;  %v2052_v45 = vpop.f32.mrb[3].mxu0  ;;  %v1078_v46 = vrot.slane %v1063_v42, %v282_v50  ;;  %v1734_v26 = vld [vmem:[%s2911_s6] ss:$0 sm:$0xff] }
 0x512   :  { %v1071_v47 = vmul.f32 %v1070_v44, %v2695_v37  ;;  %v1072_v48 = vmul.f32 %v1070_v44, %v2699_v39  ;;  %v1073_v49 = vmul.f32 %v2693_v36, %v1070_v44  ;;  %v1074_v51 = vmul.f32 %v2697_v38, %v1070_v44 }
 0x514   :  { %v1079_v52 = vadd.f32 %v1078_v46, %v1071_v47  ;;  %v1080_v43 = vadd.f32 %v1078_v46, %v1072_v48  ;;  %v1081_v55 = vadd.f32 %v1078_v46, %v1073_v49  ;;  %v1082_v56 = vadd.f32 %v1078_v46, %v1074_v51 }
 0x516   :  { %vm1083_vm0 = vcmp.ge.f32.partialorder %v1079_v52, 0.0  ;;  %vm1084_vm2 = vcmp.ge.f32.partialorder %v1080_v43, 0.0  ;;  %vm1085_vm4 = vcmp.ge.f32.partialorder %v1081_v55, 0.0  ;;  %vm1086_vm9 = vcmp.ge.f32.partialorder %v1082_v56, 0.0 }
 0x517   :  { %v1094_v16 = vmul.f32 %v1734_v26, %v1079_v52  ;;  %v1095_v50 = vmul.f32 %v1734_v26, %v1080_v43  ;;  %v1096_v37 = vmul.f32 %v1734_v26, %v1081_v55  ;;  %v1097_v39 = vmul.f32 %v1734_v26, %v1082_v56 }
 0x519   :  { %v1098_v57 = vsel %vm1083_vm0, %v1079_v52, %v1094_v16  ;;  %v1099_v36 = vsel %vm1084_vm2, %v1080_v43, %v1095_v50  ;;  %v1100_v58 = vsel %vm1085_vm4, %v1081_v55, %v1096_v37  ;;  %v1101_v38 = vsel %vm1086_vm9, %v1082_v56, %v1097_v39 }
 0x51a   :  { %v1811_v60 = vpack.c.bf16 %v1098_v57, %v1098_v57  ;;  %v1812_v62 = vpack.c.bf16 %v1099_v36, %v1099_v36  ;;  %v1813_v63 = vpack.c.bf16 %v1100_v58, %v1100_v58  ;;  %v1814_v1 = vpack.c.bf16 %v1101_v38, %v1101_v38 }
 0x51c   :  { %v1127_v53 = vshrl.u32 %v1811_v60, 16  ;;  %v1135_v10 = vshrl.u32 %v1812_v62, 16  ;;  %v1144_v2 = vshrl.u32 %v1813_v63, 16  ;;  %v1152_v11 = vshrl.u32 %v1814_v1, 16 }
 0x51d   :  { %v1130_v54 = vshll.u32 %v1811_v60, 16  ;;  %v1138_v61 = vshll.u32 %v1812_v62, 16  ;;  %v1147_v14 = vshll.u32 %v1813_v63, 16  ;;  %v1155_v7 = vshll.u32 %v1814_v1, 16 }
 0x51e   :  { %v1129_v3 = vrot.slane %v1127_v53, 7  ;;  %v1137_v59 = vrot.slane %v1135_v10, 7  ;;  %v1146_v5 = vrot.slane %v1144_v2, 7  ;;  %v1154_v6 = vrot.slane %v1152_v11, 7 }
 0x520   :  { %v1132_v8 = vor.u32 %v1130_v54, %v1129_v3  ;;  %v1133_v12 = vrot.slane %v1129_v3, 4  ;;  %v1140_v15 = vor.u32 %v1138_v61, %v1137_v59  ;;  %v1142_v18 = vrot.slane %v1137_v59, 4 }
 0x521   :  { %v1149_v22 = vor.u32 %v1147_v14, %v1146_v5  ;;  %v1150_v23 = vrot.slane %v1146_v5, 4  ;;  %v1157_v24 = vor.u32 %v1155_v7, %v1154_v6  ;;  %v1159_v25 = vrot.slane %v1154_v6, 4 }
 0x522   :  { %v1141_v17 = vsel %vm2530_vm13, %v1133_v12, %v1140_v15  ;;  %v1167_v28 = vsel %vm2535_vm14, %v1132_v8, %v1166_v13  ;;  %v1171_v29 = vsel %vm2466_vm6, %v1142_v18, %v1170_v4  ;;  %v2217_v15 = vld [vmem:[%s2910_s8 + $0x8] sm:$0xff]  }
 0x523   :  { %v1158_v31 = vsel %vm2530_vm13, %v1150_v23, %v1157_v24  ;;  %1168 = vst [vmem:[#allocation3] sm:$0xf] %v1167_v28  ;;  %1169 = vst [vmem:[#allocation3 + $0x4] sm:$0xf] %v1141_v17  ;;  %v1174_v32 = vsel %vm2535_vm14, %v1149_v22, %v1173_v19  ;;  %v1178_v33 = vsel %vm2466_vm6, %v1159_v25, %v1177_v21  ;;  %v2219_v21 = vld [vmem:[%s2910_s8 + $0x18] sm:$0xff]   ;;  %v2220_v22 = vld [vmem:[%s2910_s8 + $0x20] sm:$0xff]  }
 0x524   :  { %1172 = vst [vmem:[#allocation3 + $0x8] sm:$0x1] %v1171_v29  ;;  %1175 = vst [vmem:[#allocation3 + $0xc] sm:$0xf] %v1174_v32  ;;  %v2222_v23 = vld [vmem:[%s2910_s8 + $0x30] sm:$0xff]   ;;  %v2223_v25 = vld [vmem:[%s2910_s8 + $0x38] sm:$0xff]  }
 0x525   :  { %1176 = vst [vmem:[#allocation3 + $0x10] sm:$0xf] %v1158_v31  ;;  %1179 = vst [vmem:[#allocation3 + $0x14] sm:$0x1] %v1178_v33  ;;  %v2225_v29 = vld [vmem:[%s2910_s8 + $0x80] sm:$0xff]  }
 0x52a   :  { %v1180_v34 = vld [vmem:[#allocation3] sm:$0xf]  ;;  %v2786_v40 = vld [vmem:[#allocation3 + $0x4] sm:$0xf] }
 0x52b   :  { %v2788_v41 = vld [vmem:[#allocation3 + $0x8] sm:$0x1]  ;;  %v1203_v42 = vshrl.u32 %v1180_v34, 16  ;;  %v1206_v20 = vshll.u32 %v1180_v34, 16  ;;  %v1212_v44 = vshll.u32 %v2786_v40, 16  ;;  %v1216_v45 = vshrl.u32 %v2786_v40, 16 }
 0x52c   :  { %v2792_v46 = vld [vmem:[#allocation3 + $0xc] sm:$0xf]  ;;  %v1222_v27 = vshll.u32 %v2788_v41, 16  ;;  %v2795_v30 = vld [vmem:[#allocation3 + $0x10] sm:$0xf]  ;;  %v1765_v19 = vcombine.low %v1180_v34, %v2786_v40  ;;  %v1489_v24 = vrot.slane %v2786_v40, 5 }
 0x52d   :  { %v1227_v47 = vshrl.u32 %v2792_v46, 16  ;;  %v1205_v48 = vrot.slane %v1203_v42, 4  ;;  %v1208_v49 = vrot.slane %v1206_v20, 5  ;;  %v1214_v51 = vrot.slane %v1212_v44, 5  ;;  %v1201_v43 = vld [vmem:[#allocation3 + $0x14] sm:$0x1] }
 0x52e   :  { %v1218_v52 = vrot.slane %v1216_v45, 4  ;;  %v1230_v56 = vshll.u32 %v2792_v46, 16  ;;  %v1236_v26 = vshll.u32 %v2795_v30, 16  ;;  %v1240_v37 = vshrl.u32 %v2795_v30, 16  ;;  %v1482_v39 = vld [vmem:[#allocation3 + $0xc] sm:$0xe] }
 0x52f   :  { %v1229_v55 = vrot.slane %v1227_v47, 4  ;;  %v1209_v16 = vor.u32 %v1208_v49, %v1205_v48  ;;  %v1224_v57 = vrot.slane %v1222_v27, 5  ;;  %v1246_v63 = vshll.u32 %v1201_v43, 16  ;;  %v1481_v17 = vld [vmem:[#allocation3] sm:$0xe]  ;;  %v2226_v42 = vld [vmem:[%s2910_s8 + $0x88] sm:$0xff]  }
 0x530   :  { %v1219_v50 = vor.u32 %v1218_v52, %v1214_v51  ;;  %v1232_v36 = vrot.slane %v1230_v56, 5  ;;  %v1238_v58 = vrot.slane %v1236_v26, 5  ;;  %v1242_v62 = vrot.slane %v1240_v37, 4  ;;  %v2229_v44 = vld [vmem:[%s2910_s8 + $0xa0] sm:$0xff]   ;;  %v2230_v45 = vld [vmem:[%s2910_s8 + $0xa8] sm:$0xff]   ;;  %v2232_v27 = vld [vmem:[%s2910_s8 + $0xb8] sm:$0xff]  }
 0x531   :  { %v1210_v38 = vrot.slane %v1209_v16, 4  ;;  %v1776_v53 = vrot.slane %v1482_v39, 9  ;;  %v1496_v3 = vrot.slane %v2795_v30, 5  ;;  %v1248_v13 = vrot.slane %v1246_v63, 5 }
 0x532   :  { %v1220_v60 = vrot.slane %v1219_v50, 4  ;;  %v1233_v1 = vor.u32 %v1232_v36, %v1229_v55  ;;  %v1243_v11 = vor.u32 %v1242_v62, %v1238_v58  ;;  %v1499_v14 = vrot.slane %v1201_v43, 5 }
 0x533   :  { %v1215_v10 = vsel %vm2568_vm5, %v1210_v38, %v1214_v51  ;;  %v1498_v5 = vrot.slane %v1496_v3, 4  ;;  %v2812_v4 = vsel %vm2578_vm8, %v1776_v53, %v1496_v3  ;;  %v1491_v28 = vrot.slane %v1489_v24, 4 }
 0x534   :  { %v1225_v2 = vsel %vm2568_vm5, %v1220_v60, %v1224_v57  ;;  %v1234_v59 = vrot.slane %v1233_v1, 4  ;;  %v1244_v61 = vrot.slane %v1243_v11, 4  ;;  %v1775_v31 = vrot.slane %v1481_v17, 9  ;;  %v2253_v60 = vld [vmem:[%s2900_s0 + $0x10] sm:$0xff]  ;;  %v2254_v1 = vld [vmem:[%s2900_s0] sm:$0xff] }
 0x535   :  { %v1755_v54 = vcombine.low %v1215_v10, %v1225_v2  ;;  %v2816_v8 = vsel %vm2578_vm8, %v1498_v5, %v1499_v14  ;;  %v1492_v32 = vrot.slane %v2788_v41, 5  ;;  %v1766_v34 = vcombine.low %v2792_v46, %v2795_v30  ;;  %v2227_v41 = vld [vmem:[%s2910_s8 + $0x90] sm:$0xff]  }
 0x536   :  { %v1239_v6 = vsel %vm2568_vm5, %v1234_v59, %v1238_v58  ;;  %v1249_v7 = vsel %vm2568_vm5, %v1244_v61, %v1248_v13  ;;  %v1794_v18 = vcombine.low %v2812_v4, %v2816_v8  ;;  %v1490_v40 = vsel %vm2578_vm8, %v1775_v31, %v1489_v24  ;;  %v2231_v46 = vld [vmem:[%s2910_s8 + $0xb0] sm:$0xff]  }
 0x537   :  { %2069 = vmatprep.mubr.bf16.mxu0 %v1755_v54  ;;  %v1756_v12 = vcombine.low %v1239_v6, %v1249_v7  ;;  %v1493_v33 = vsel %vm2578_vm8, %v1491_v28, %v1492_v32 }
 0x538   :  { %v1793_v20 = vcombine.low %v1490_v40, %v1493_v33 }
 0x539   :  { %2070 = vmatmul.mubr.bf16.vlgmr.msra.gmra.mrb[4].mxu0 %v1756_v12 }
 0x53a   :  { %2074 = vmatpush3.bf16.msra.mxu0 %v2761_v0  ;;  %2089 = vmatprep.mubr.bf16.mxu0 %v1765_v19  ;;  %v2221_v0 = vld [vmem:[%s2910_s8 + $0x28] sm:$0xff]  }
 0x53b   :  { %2075 = vmatprep.subr.bf16.mxu0 %v2217_v15 }
 0x53e   :  { %2076 = vmatpush3.bf16.msra.mxu0 %v2217_v15 }
 0x53f   :  { %2077 = vmatprep.subr.bf16.mxu0 %v2218_v9 }
 0x542   :  { %2078 = vmatpush3.bf16.msra.mxu0 %v2218_v9 }
 0x543   :  { %2079 = vmatprep.subr.bf16.mxu0 %v2219_v21 }
 0x546   :  { %2080 = vmatpush3.bf16.msra.mxu0 %v2219_v21 }
 0x547   :  { %2081 = vmatprep.subr.bf16.mxu0 %v2220_v22 }
 0x54a   :  { %2082 = vmatpush3.bf16.msra.mxu0 %v2220_v22 }
 0x54b   :  { %2083 = vmatprep.subr.bf16.mxu0 %v2221_v0 }
 0x54e   :  { %2084 = vmatpush3.bf16.msra.mxu0 %v2221_v0 }
 0x54f   :  { %2085 = vmatprep.subr.bf16.mxu0 %v2222_v23 }
 0x552   :  { %2086 = vmatpush3.bf16.msra.mxu0 %v2222_v23 }
 0x553   :  { %2087 = vmatprep.subr.bf16.mxu0 %v2223_v25 }
 0x556   :  { %2088 = vmatpush3.bf16.msra.mxu0 %v2223_v25 }
 0x557   :  { %2093 = vmatprep.subr.bf16.mxu0 %v2225_v29 }
 0x559   :  { %2090 = vmatmul.mubr.bf16.vlgmr.msra.gmra.mrb[4].mxu0 %v1766_v34 }
 0x55a   :  { %2094 = vmatpush3.bf16.msra.mxu0 %v2225_v29  ;;  %2109 = vmatprep.mubr.bf16.mxu0 %v1793_v20 }
 0x55b   :  { %2095 = vmatprep.subr.bf16.mxu0 %v2226_v42 }
 0x55e   :  { %2096 = vmatpush3.bf16.msra.mxu0 %v2226_v42 }
 0x55f   :  { %2097 = vmatprep.subr.bf16.mxu0 %v2227_v41 }
 0x562   :  { %2098 = vmatpush3.bf16.msra.mxu0 %v2227_v41 }
 0x563   :  { %2099 = vmatprep.subr.bf16.mxu0 %v2228_v35 }
 0x566   :  { %2100 = vmatpush3.bf16.msra.mxu0 %v2228_v35 }
 0x567   :  { %2101 = vmatprep.subr.bf16.mxu0 %v2229_v44 }
 0x56a   :  { %2102 = vmatpush3.bf16.msra.mxu0 %v2229_v44 }
 0x56b   :  { %2103 = vmatprep.subr.bf16.mxu0 %v2230_v45 }
 0x56e   :  { %2104 = vmatpush3.bf16.msra.mxu0 %v2230_v45 }
 0x56f   :  { %2105 = vmatprep.subr.bf16.mxu0 %v2231_v46 }
 0x572   :  { %2106 = vmatpush3.bf16.msra.mxu0 %v2231_v46 }
 0x573   :  { %2107 = vmatprep.subr.bf16.mxu0 %v2232_v27 }
 0x576   :  { %2108 = vmatpush3.bf16.msra.mxu0 %v2232_v27 }
 0x579   :  { %2110 = vmatmul.mubr.bf16.vlgmr.msra.gmra.mrb[4].mxu0 %v1794_v18 }
 0x64c   :  { %v2111_v30 = vpop.f32.mrb[4].mxu0 }
 0x64d   :  { %v1805_v47 = vmul.f32 -1.442695, %v2111_v30  ;;  %v1608_v48 = vpop.f32.mrb[5].mxu0 }
 0x64e   :  { %v1803_v49 = vmul.f32 -1.442695, %v1608_v48  ;;  %v2112_v51 = vpop.f32.mrb[6].mxu0 }
 0x64f   :  { %2237 = vpow2.f32 %v1805_v47  ;;  %v1806_v52 = vmul.f32 -1.442695, %v2112_v51  ;;  %v1611_v43 = vpop.f32.mrb[7].mxu0 }
 0x650   :  { %2239 = vpow2.f32 %v1803_v49  ;;  %v1804_v55 = vmul.f32 -1.442695, %v1611_v43 }
 0x651   :  { %2241 = vpow2.f32 %v1806_v52 }
 0x652   :  { %2243 = vpow2.f32 %v1804_v55 }
 0x659   :  { %v2238_v56 = vpop.eup %2237 }
 0x65a   :  { %v2240_v26 = vpop.eup %2239  ;;  %v1641_v16 = vadd.f32 1.0, %v2238_v56 }
 0x65b   :  { %v2242_v50 = vpop.eup %2241  ;;  %v1639_v37 = vadd.f32 1.0, %v2240_v26 }
 0x65c   :  { %v2244_v39 = vpop.eup %2243  ;;  %2245 = vrcp.f32 %v1641_v16  ;;  %v1642_v57 = vadd.f32 1.0, %v2242_v50 }
 0x65d   :  { %2247 = vrcp.f32 %v1639_v37  ;;  %v1640_v36 = vadd.f32 1.0, %v2244_v39 }
 0x65e   :  { %2249 = vrcp.f32 %v1642_v57 }
 0x65f   :  { %2251 = vrcp.f32 %v1640_v36 }
 0x666   :  { %v2246_v58 = vpop.eup %2245 }
 0x667   :  { %v2248_v38 = vpop.eup %2247  ;;  %v1653_v62 = vmul.f32 %v2253_v60, %v2246_v58 }
 0x668   :  { %v2250_v63 = vpop.eup %2249  ;;  %v1651_v53 = vmul.f32 %v2254_v1, %v2248_v38 }
 0x669   :  { %v2252_v10 = vpop.eup %2251  ;;  %1657 = vst [vmem:[%s2912_s13 + $0x10] sm:$0xff] %v1653_v62 }
 0x670   :  { %v2255_v2 = vld [vmem:[%s2900_s0 + $0x18] sm:$0xff] }
 0x671   :  { %v1654_v11 = vmul.f32 %v2255_v2, %v2250_v63  ;;  %1655 = vst [vmem:[%s2912_s13] sm:$0xff] %v1651_v53 }
 0x678   :  { %v2256_v3 = vld [vmem:[%s2900_s0 + $0x8] sm:$0xff] }
 0x679   :  { %v1652_v54 = vmul.f32 %v2256_v3, %v2252_v10  ;;  %1658 = vst [vmem:[%s2912_s13 + $0x18] sm:$0xff] %v1654_v11 }
 0x67b   :  { %1656 = vst [vmem:[%s2912_s13 + $0x8] sm:$0xff] %v1652_v54 }

</bundles_post_ra>
